<compile_context>
chip_gen: v7x
topology: tpu7x:2x2x1
jax: 0.10.0
libtpu: 0.0.40
codegen_flags: <defaults>
</compile_context>

<pallas_src>
import functools

import numpy as np

import jax
import jax.numpy as jnp
from jax import lax
from jax.experimental import pallas as pl
from jax.experimental.pallas import tpu as pltpu


def _rips_dim0_kernel(xt_ref, out_ref, *, n, npad, dpad, rmax):
    # xt_ref : VMEM f32[dpad, npad]  points transposed, zero padded
    #          (xt[k, i] = x[i, k] for i < n, k < d; 0 otherwise)
    # out_ref: VMEM f32[1, npad]     lanes [0, n-2] = MST edge lengths (dim-0 deaths)
    xvt = xt_ref[...]                                            # (dpad, npad)

    lane = lax.broadcasted_iota(jnp.int32, (1, npad), 1)         # (1, npad)
    lane_d = lax.broadcasted_iota(jnp.int32, (dpad, npad), 1)    # (dpad, npad)
    inf_row = jnp.full((1, npad), jnp.inf, jnp.float32)
    zero_row = jnp.zeros((1, npad), jnp.float32)

    def row_sq(j):
        # Squared distances from vertex j to all vertices, recomputed from the
        # points: select column j of x^T (masked lane-reduce), subtract,
        # square, reduce over the feature sublanes.  Padded feature rows are
        # zero on both sides -> contribute 0.  No matmul, no NaNs.
        sel = lane_d == j                                        # (dpad, npad)
        xj = jnp.sum(jnp.where(sel, xvt, 0.0), axis=1, keepdims=True)   # (dpad, 1)
        diff = xvt - xj                                          # (dpad, npad)
        return jnp.sum(diff * diff, axis=0, keepdims=True)       # (1, npad)

    # Prim's MST seeded at vertex 0.  `blocked` holds +inf for visited and
    # padded lanes so a single add keeps them out of future minima.
    blocked0 = jnp.where((lane == 0) | (lane >= n), inf_row, zero_row)
    mindist0 = row_sq(jnp.zeros((1, 1), jnp.int32)) + blocked0   # squared distances
    deaths0 = zero_row

    def body(k, carry):
        mindist, blocked, deaths = carry
        m2 = jnp.min(mindist, axis=1, keepdims=True)             # (1,1) XLU reduce
        deaths = jnp.where(lane == k, m2, deaths)
        j = jnp.min(jnp.where(mindist == m2, lane, npad),
                    axis=1, keepdims=True)                        # (1,1) argmin
        row_j = row_sq(j)
        blocked = jnp.where(lane == j, inf_row, blocked)
        mindist = jnp.minimum(mindist, row_j) + blocked
        return mindist, blocked, deaths

    trips = max(n - 1, 0)
    unroll = True if trips <= 32 else 4
    _, _, deaths = lax.fori_loop(0, trips, body, (mindist0, blocked0, deaths0),
                                 unroll=unroll)

    # sqrt only on the final (1, npad) vector; Rips threshold rmax -> +inf.
    dist = jnp.sqrt(deaths)
    out_ref[...] = jnp.where(dist > rmax, inf_row, dist)


def rips_layer(x, *, maxdim=1, rmax=float("inf")):
    """JAX/Pallas equivalent of RipsLayer(maxdim, rmax)(x) -> (dgms, True)."""
    x = jnp.asarray(x, jnp.float32)
    n, d = x.shape
    empty = tuple(jnp.zeros((0, 2), jnp.float32) for _ in range(maxdim))
    if n == 0:
        return (jnp.zeros((0, 2), jnp.float32),) + empty, True

    npad = max(128, ((n + 127) // 128) * 128)     # lane-dense points / output
    dpad = max(8, ((d + 7) // 8) * 8)             # sublane multiple is enough

    # Single tiny input: transposed, zero-padded points.
    xpt = jnp.zeros((dpad, npad), jnp.float32).at[:d, :n].set(x.T)

    kernel = functools.partial(_rips_dim0_kernel, n=int(n), npad=int(npad),
                               dpad=int(dpad), rmax=float(rmax))
    deaths = pl.pallas_call(
        kernel,
        out_shape=jax.ShapeDtypeStruct((1, npad), jnp.float32),
        in_specs=[pl.BlockSpec(memory_space=pltpu.MemorySpace.VMEM)],
        out_specs=pl.BlockSpec(memory_space=pltpu.MemorySpace.VMEM),
        compiler_params=pltpu.CompilerParams(
            # No O(n^2) scratch anymore -- resident buffers are just the
            # (dpad, npad) points and the (1, npad) output.  32 MiB matches the
            # v6e/v7x default and raises v5e's 16 MiB default with headroom.
            vmem_limit_bytes=32 * 1024 * 1024,
        ),
    )(xpt)

    finite_deaths = deaths[0, : n - 1]
    births = jnp.zeros((n,), jnp.float32)
    dim0_deaths = jnp.concatenate(
        [finite_deaths, jnp.array([jnp.inf], jnp.float32)])
    dgm0 = jnp.stack([births, dim0_deaths], axis=1)               # (n, 2)

    # TODO(synk): dims >= 1 (boundary-matrix reduction) are not translatable to
    # a Pallas kernel; return empty diagrams (no -inf filler rows to remove).
    return (dgm0,) + empty, True


def _reference_dim0_deaths(x):
    """Host-side Prim's MST: sorted finite dim-0 deaths of the Rips filtration."""
    x = np.asarray(x, np.float64)
    n = x.shape[0]
    d = np.sqrt(((x[:, None, :] - x[None, :, :]) ** 2).sum(-1))
    visited = np.zeros(n, bool)
    visited[0] = True
    mind = d[0].copy()
    mind[visited] = np.inf
    deaths = []
    for _ in range(n - 1):
        j = int(np.argmin(mind))
        deaths.append(float(mind[j]))
        visited[j] = True
        mind = np.minimum(mind, d[j])
        mind[visited] = np.inf
    return np.sort(np.asarray(deaths))


if __name__ == "__main__":
    key = jax.random.PRNGKey(0)
    x = jax.random.uniform(key, (24, 3), jnp.float32)   # small point cloud

    dgms, issublevel = rips_layer(x, maxdim=1)
    dgms = jax.block_until_ready(dgms)

    assert issublevel is True
    dgm0, dgm1 = dgms
    assert dgm0.shape == (24, 2)
    assert dgm1.shape == (0, 2)

    # dim-0 checks: all births 0, one essential bar, finite deaths == MST weights
    dgm0_np = np.asarray(dgm0)
    assert np.all(dgm0_np[:, 0] == 0.0)
    assert np.all(np.isfinite(dgm0_np[:, 1][:-0 or None]) | np.isinf(dgm0_np[:, 1]))
    deaths_sorted = np.sort(dgm0_np[:, 1])
    assert not np.any(np.isnan(deaths_sorted))
    assert np.isinf(deaths_sorted[-1])
    ref = _reference_dim0_deaths(np.asarray(x))
    np.testing.assert_allclose(deaths_sorted[:-1], ref, rtol=1e-4, atol=1e-4)

    print("KERNEL_OK")
</pallas_src>

<mosaic_0001>
module attributes {stable_mosaic.version = 11 : i64} {
  func.func @_rips_dim0_kernel(%arg0: memref<8x128xf32, #tpu.memory_space<vmem>>, %arg1: memref<1x128xf32, #tpu.memory_space<vmem>>) attributes {dimension_semantics = [], scalar_prefetch = 0 : i64, scratch_operands = 0 : i64, tpu.core_type = #tpu.core_type<tc>} {
    %c0 = arith.constant 0 : index
    %c0_0 = arith.constant 0 : index
    %0 = vector.load %arg0[%c0, %c0_0] : memref<8x128xf32, #tpu.memory_space<vmem>>, vector<8x128xf32>
    %1 = tpu.iota {dimensions = array<i32: 1>} : vector<1x128xi32>
    %2 = tpu.iota {dimensions = array<i32: 1>} : vector<8x128xi32>
    %cst = arith.constant 0x7F800000 : f32
    %3 = vector.broadcast %cst : f32 to vector<1x128xf32>
    %cst_1 = arith.constant 0.000000e+00 : f32
    %4 = vector.broadcast %cst_1 : f32 to vector<1x128xf32>
    %c0_i32 = arith.constant 0 : i32
    %5 = vector.broadcast %c0_i32 : i32 to vector<1x128xi32>
    %6 = arith.cmpi eq, %1, %5 : vector<1x128xi32>
    %c24_i32 = arith.constant 24 : i32
    %7 = vector.broadcast %c24_i32 : i32 to vector<1x128xi32>
    %8 = arith.cmpi sge, %1, %7 : vector<1x128xi32>
    %9 = arith.ori %6, %8 : vector<1x128xi1>
    %10 = arith.select %9, %3, %4 : vector<1x128xi1>, vector<1x128xf32>
    %c0_i32_2 = arith.constant 0 : i32
    %11 = vector.broadcast %c0_i32_2 : i32 to vector<1x1xi32>
    %12 = vector.broadcast %11 : vector<1x1xi32> to vector<8x128xi32>
    %13 = arith.cmpi eq, %2, %12 : vector<8x128xi32>
    %cst_3 = arith.constant 0.000000e+00 : f32
    %14 = vector.broadcast %cst_3 : f32 to vector<8x128xf32>
    %15 = arith.select %13, %0, %14 : vector<8x128xi1>, vector<8x128xf32>
    %cst_4 = arith.constant dense<0.000000e+00> : vector<8xf32>
    %16 = vector.multi_reduction <add>, %15, %cst_4 [1] : vector<8x128xf32> to vector<8xf32>
    %17 = vector.shape_cast %16 : vector<8xf32> to vector<8x1xf32>
    %18 = vector.broadcast %17 : vector<8x1xf32> to vector<8x128xf32>
    %19 = arith.subf %0, %18 : vector<8x128xf32>
    %20 = arith.mulf %19, %19 : vector<8x128xf32>
    %cst_5 = arith.constant dense<0.000000e+00> : vector<128xf32>
    %21 = vector.multi_reduction <add>, %20, %cst_5 [0] : vector<8x128xf32> to vector<128xf32>
    %22 = vector.shape_cast %21 : vector<128xf32> to vector<1x128xf32>
    %23 = arith.addf %22, %10 : vector<1x128xf32>
    %c0_i32_6 = arith.constant 0 : i32
    %cst_7 = arith.constant dense<0x7F800000> : vector<1xf32>
    %24 = vector.multi_reduction <minimumf>, %23, %cst_7 [1] : vector<1x128xf32> to vector<1xf32>
    %25 = vector.shape_cast %24 : vector<1xf32> to vector<1x1xf32>
    %26 = vector.broadcast %c0_i32_6 : i32 to vector<1x128xi32>
    %27 = arith.cmpi eq, %1, %26 : vector<1x128xi32>
    %28 = vector.shape_cast %25 : vector<1x1xf32> to vector<1x1xf32>
    %29 = vector.broadcast %28 : vector<1x1xf32> to vector<1x128xf32>
    %30 = arith.select %27, %29, %4 : vector<1x128xi1>, vector<1x128xf32>
    %31 = vector.broadcast %25 : vector<1x1xf32> to vector<1x128xf32>
    %32 = arith.cmpf oeq, %23, %31 : vector<1x128xf32>
    %c128_i32 = arith.constant 128 : i32
    %33 = vector.broadcast %c128_i32 : i32 to vector<1x128xi32>
    %34 = arith.select %32, %1, %33 : vector<1x128xi1>, vector<1x128xi32>
    %cst_8 = arith.constant dense<2147483647> : vector<1xi32>
    %35 = vector.multi_reduction <minsi>, %34, %cst_8 [1] : vector<1x128xi32> to vector<1xi32>
    %36 = vector.shape_cast %35 : vector<1xi32> to vector<1x1xi32>
    %37 = vector.broadcast %36 : vector<1x1xi32> to vector<8x128xi32>
    %38 = arith.cmpi eq, %2, %37 : vector<8x128xi32>
    %cst_9 = arith.constant 0.000000e+00 : f32
    %39 = vector.broadcast %cst_9 : f32 to vector<8x128xf32>
    %40 = arith.select %38, %0, %39 : vector<8x128xi1>, vector<8x128xf32>
    %cst_10 = arith.constant dense<0.000000e+00> : vector<8xf32>
    %41 = vector.multi_reduction <add>, %40, %cst_10 [1] : vector<8x128xf32> to vector<8xf32>
    %42 = vector.shape_cast %41 : vector<8xf32> to vector<8x1xf32>
    %43 = vector.broadcast %42 : vector<8x1xf32> to vector<8x128xf32>
    %44 = arith.subf %0, %43 : vector<8x128xf32>
    %45 = arith.mulf %44, %44 : vector<8x128xf32>
    %cst_11 = arith.constant dense<0.000000e+00> : vector<128xf32>
    %46 = vector.multi_reduction <add>, %45, %cst_11 [0] : vector<8x128xf32> to vector<128xf32>
    %47 = vector.shape_cast %46 : vector<128xf32> to vector<1x128xf32>
    %48 = vector.broadcast %36 : vector<1x1xi32> to vector<1x128xi32>
    %49 = arith.cmpi eq, %1, %48 : vector<1x128xi32>
    %50 = arith.select %49, %3, %10 : vector<1x128xi1>, vector<1x128xf32>
    %51 = arith.minimumf %23, %47 : vector<1x128xf32>
    %52 = arith.addf %51, %50 : vector<1x128xf32>
    %c1_i32 = arith.constant 1 : i32
    %cst_12 = arith.constant dense<0x7F800000> : vector<1xf32>
    %53 = vector.multi_reduction <minimumf>, %52, %cst_12 [1] : vector<1x128xf32> to vector<1xf32>
    %54 = vector.shape_cast %53 : vector<1xf32> to vector<1x1xf32>
    %55 = vector.broadcast %c1_i32 : i32 to vector<1x128xi32>
    %56 = arith.cmpi eq, %1, %55 : vector<1x128xi32>
    %57 = vector.shape_cast %54 : vector<1x1xf32> to vector<1x1xf32>
    %58 = vector.broadcast %57 : vector<1x1xf32> to vector<1x128xf32>
    %59 = arith.select %56, %58, %30 : vector<1x128xi1>, vector<1x128xf32>
    %60 = vector.broadcast %54 : vector<1x1xf32> to vector<1x128xf32>
    %61 = arith.cmpf oeq, %52, %60 : vector<1x128xf32>
    %c128_i32_13 = arith.constant 128 : i32
    %62 = vector.broadcast %c128_i32_13 : i32 to vector<1x128xi32>
    %63 = arith.select %61, %1, %62 : vector<1x128xi1>, vector<1x128xi32>
    %cst_14 = arith.constant dense<2147483647> : vector<1xi32>
    %64 = vector.multi_reduction <minsi>, %63, %cst_14 [1] : vector<1x128xi32> to vector<1xi32>
    %65 = vector.shape_cast %64 : vector<1xi32> to vector<1x1xi32>
    %66 = vector.broadcast %65 : vector<1x1xi32> to vector<8x128xi32>
    %67 = arith.cmpi eq, %2, %66 : vector<8x128xi32>
    %cst_15 = arith.constant 0.000000e+00 : f32
    %68 = vector.broadcast %cst_15 : f32 to vector<8x128xf32>
    %69 = arith.select %67, %0, %68 : vector<8x128xi1>, vector<8x128xf32>
    %cst_16 = arith.constant dense<0.000000e+00> : vector<8xf32>
    %70 = vector.multi_reduction <add>, %69, %cst_16 [1] : vector<8x128xf32> to vector<8xf32>
    %71 = vector.shape_cast %70 : vector<8xf32> to vector<8x1xf32>
    %72 = vector.broadcast %71 : vector<8x1xf32> to vector<8x128xf32>
    %73 = arith.subf %0, %72 : vector<8x128xf32>
    %74 = arith.mulf %73, %73 : vector<8x128xf32>
    %cst_17 = arith.constant dense<0.000000e+00> : vector<128xf32>
    %75 = vector.multi_reduction <add>, %74, %cst_17 [0] : vector<8x128xf32> to vector<128xf32>
    %76 = vector.shape_cast %75 : vector<128xf32> to vector<1x128xf32>
    %77 = vector.broadcast %65 : vector<1x1xi32> to vector<1x128xi32>
    %78 = arith.cmpi eq, %1, %77 : vector<1x128xi32>
    %79 = arith.select %78, %3, %50 : vector<1x128xi1>, vector<1x128xf32>
    %80 = arith.minimumf %52, %76 : vector<1x128xf32>
    %81 = arith.addf %80, %79 : vector<1x128xf32>
    %c2_i32 = arith.constant 2 : i32
    %cst_18 = arith.constant dense<0x7F800000> : vector<1xf32>
    %82 = vector.multi_reduction <minimumf>, %81, %cst_18 [1] : vector<1x128xf32> to vector<1xf32>
    %83 = vector.shape_cast %82 : vector<1xf32> to vector<1x1xf32>
    %84 = vector.broadcast %c2_i32 : i32 to vector<1x128xi32>
    %85 = arith.cmpi eq, %1, %84 : vector<1x128xi32>
    %86 = vector.shape_cast %83 : vector<1x1xf32> to vector<1x1xf32>
    %87 = vector.broadcast %86 : vector<1x1xf32> to vector<1x128xf32>
    %88 = arith.select %85, %87, %59 : vector<1x128xi1>, vector<1x128xf32>
    %89 = vector.broadcast %83 : vector<1x1xf32> to vector<1x128xf32>
    %90 = arith.cmpf oeq, %81, %89 : vector<1x128xf32>
    %c128_i32_19 = arith.constant 128 : i32
    %91 = vector.broadcast %c128_i32_19 : i32 to vector<1x128xi32>
    %92 = arith.select %90, %1, %91 : vector<1x128xi1>, vector<1x128xi32>
    %cst_20 = arith.constant dense<2147483647> : vector<1xi32>
    %93 = vector.multi_reduction <minsi>, %92, %cst_20 [1] : vector<1x128xi32> to vector<1xi32>
    %94 = vector.shape_cast %93 : vector<1xi32> to vector<1x1xi32>
    %95 = vector.broadcast %94 : vector<1x1xi32> to vector<8x128xi32>
    %96 = arith.cmpi eq, %2, %95 : vector<8x128xi32>
    %cst_21 = arith.constant 0.000000e+00 : f32
    %97 = vector.broadcast %cst_21 : f32 to vector<8x128xf32>
    %98 = arith.select %96, %0, %97 : vector<8x128xi1>, vector<8x128xf32>
    %cst_22 = arith.constant dense<0.000000e+00> : vector<8xf32>
    %99 = vector.multi_reduction <add>, %98, %cst_22 [1] : vector<8x128xf32> to vector<8xf32>
    %100 = vector.shape_cast %99 : vector<8xf32> to vector<8x1xf32>
    %101 = vector.broadcast %100 : vector<8x1xf32> to vector<8x128xf32>
    %102 = arith.subf %0, %101 : vector<8x128xf32>
    %103 = arith.mulf %102, %102 : vector<8x128xf32>
    %cst_23 = arith.constant dense<0.000000e+00> : vector<128xf32>
    %104 = vector.multi_reduction <add>, %103, %cst_23 [0] : vector<8x128xf32> to vector<128xf32>
    %105 = vector.shape_cast %104 : vector<128xf32> to vector<1x128xf32>
    %106 = vector.broadcast %94 : vector<1x1xi32> to vector<1x128xi32>
    %107 = arith.cmpi eq, %1, %106 : vector<1x128xi32>
    %108 = arith.select %107, %3, %79 : vector<1x128xi1>, vector<1x128xf32>
    %109 = arith.minimumf %81, %105 : vector<1x128xf32>
    %110 = arith.addf %109, %108 : vector<1x128xf32>
    %c3_i32 = arith.constant 3 : i32
    %cst_24 = arith.constant dense<0x7F800000> : vector<1xf32>
    %111 = vector.multi_reduction <minimumf>, %110, %cst_24 [1] : vector<1x128xf32> to vector<1xf32>
    %112 = vector.shape_cast %111 : vector<1xf32> to vector<1x1xf32>
    %113 = vector.broadcast %c3_i32 : i32 to vector<1x128xi32>
    %114 = arith.cmpi eq, %1, %113 : vector<1x128xi32>
    %115 = vector.shape_cast %112 : vector<1x1xf32> to vector<1x1xf32>
    %116 = vector.broadcast %115 : vector<1x1xf32> to vector<1x128xf32>
    %117 = arith.select %114, %116, %88 : vector<1x128xi1>, vector<1x128xf32>
    %118 = vector.broadcast %112 : vector<1x1xf32> to vector<1x128xf32>
    %119 = arith.cmpf oeq, %110, %118 : vector<1x128xf32>
    %c128_i32_25 = arith.constant 128 : i32
    %120 = vector.broadcast %c128_i32_25 : i32 to vector<1x128xi32>
    %121 = arith.select %119, %1, %120 : vector<1x128xi1>, vector<1x128xi32>
    %cst_26 = arith.constant dense<2147483647> : vector<1xi32>
    %122 = vector.multi_reduction <minsi>, %121, %cst_26 [1] : vector<1x128xi32> to vector<1xi32>
    %123 = vector.shape_cast %122 : vector<1xi32> to vector<1x1xi32>
    %124 = vector.broadcast %123 : vector<1x1xi32> to vector<8x128xi32>
    %125 = arith.cmpi eq, %2, %124 : vector<8x128xi32>
    %cst_27 = arith.constant 0.000000e+00 : f32
    %126 = vector.broadcast %cst_27 : f32 to vector<8x128xf32>
    %127 = arith.select %125, %0, %126 : vector<8x128xi1>, vector<8x128xf32>
    %cst_28 = arith.constant dense<0.000000e+00> : vector<8xf32>
    %128 = vector.multi_reduction <add>, %127, %cst_28 [1] : vector<8x128xf32> to vector<8xf32>
    %129 = vector.shape_cast %128 : vector<8xf32> to vector<8x1xf32>
    %130 = vector.broadcast %129 : vector<8x1xf32> to vector<8x128xf32>
    %131 = arith.subf %0, %130 : vector<8x128xf32>
    %132 = arith.mulf %131, %131 : vector<8x128xf32>
    %cst_29 = arith.constant dense<0.000000e+00> : vector<128xf32>
    %133 = vector.multi_reduction <add>, %132, %cst_29 [0] : vector<8x128xf32> to vector<128xf32>
    %134 = vector.shape_cast %133 : vector<128xf32> to vector<1x128xf32>
    %135 = vector.broadcast %123 : vector<1x1xi32> to vector<1x128xi32>
    %136 = arith.cmpi eq, %1, %135 : vector<1x128xi32>
    %137 = arith.select %136, %3, %108 : vector<1x128xi1>, vector<1x128xf32>
    %138 = arith.minimumf %110, %134 : vector<1x128xf32>
    %139 = arith.addf %138, %137 : vector<1x128xf32>
    %c4_i32 = arith.constant 4 : i32
    %cst_30 = arith.constant dense<0x7F800000> : vector<1xf32>
    %140 = vector.multi_reduction <minimumf>, %139, %cst_30 [1] : vector<1x128xf32> to vector<1xf32>
    %141 = vector.shape_cast %140 : vector<1xf32> to vector<1x1xf32>
    %142 = vector.broadcast %c4_i32 : i32 to vector<1x128xi32>
    %143 = arith.cmpi eq, %1, %142 : vector<1x128xi32>
    %144 = vector.shape_cast %141 : vector<1x1xf32> to vector<1x1xf32>
    %145 = vector.broadcast %144 : vector<1x1xf32> to vector<1x128xf32>
    %146 = arith.select %143, %145, %117 : vector<1x128xi1>, vector<1x128xf32>
    %147 = vector.broadcast %141 : vector<1x1xf32> to vector<1x128xf32>
    %148 = arith.cmpf oeq, %139, %147 : vector<1x128xf32>
    %c128_i32_31 = arith.constant 128 : i32
    %149 = vector.broadcast %c128_i32_31 : i32 to vector<1x128xi32>
    %150 = arith.select %148, %1, %149 : vector<1x128xi1>, vector<1x128xi32>
    %cst_32 = arith.constant dense<2147483647> : vector<1xi32>
    %151 = vector.multi_reduction <minsi>, %150, %cst_32 [1] : vector<1x128xi32> to vector<1xi32>
    %152 = vector.shape_cast %151 : vector<1xi32> to vector<1x1xi32>
    %153 = vector.broadcast %152 : vector<1x1xi32> to vector<8x128xi32>
    %154 = arith.cmpi eq, %2, %153 : vector<8x128xi32>
    %cst_33 = arith.constant 0.000000e+00 : f32
    %155 = vector.broadcast %cst_33 : f32 to vector<8x128xf32>
    %156 = arith.select %154, %0, %155 : vector<8x128xi1>, vector<8x128xf32>
    %cst_34 = arith.constant dense<0.000000e+00> : vector<8xf32>
    %157 = vector.multi_reduction <add>, %156, %cst_34 [1] : vector<8x128xf32> to vector<8xf32>
    %158 = vector.shape_cast %157 : vector<8xf32> to vector<8x1xf32>
    %159 = vector.broadcast %158 : vector<8x1xf32> to vector<8x128xf32>
    %160 = arith.subf %0, %159 : vector<8x128xf32>
    %161 = arith.mulf %160, %160 : vector<8x128xf32>
    %cst_35 = arith.constant dense<0.000000e+00> : vector<128xf32>
    %162 = vector.multi_reduction <add>, %161, %cst_35 [0] : vector<8x128xf32> to vector<128xf32>
    %163 = vector.shape_cast %162 : vector<128xf32> to vector<1x128xf32>
    %164 = vector.broadcast %152 : vector<1x1xi32> to vector<1x128xi32>
    %165 = arith.cmpi eq, %1, %164 : vector<1x128xi32>
    %166 = arith.select %165, %3, %137 : vector<1x128xi1>, vector<1x128xf32>
    %167 = arith.minimumf %139, %163 : vector<1x128xf32>
    %168 = arith.addf %167, %166 : vector<1x128xf32>
    %c5_i32 = arith.constant 5 : i32
    %cst_36 = arith.constant dense<0x7F800000> : vector<1xf32>
    %169 = vector.multi_reduction <minimumf>, %168, %cst_36 [1] : vector<1x128xf32> to vector<1xf32>
    %170 = vector.shape_cast %169 : vector<1xf32> to vector<1x1xf32>
    %171 = vector.broadcast %c5_i32 : i32 to vector<1x128xi32>
    %172 = arith.cmpi eq, %1, %171 : vector<1x128xi32>
    %173 = vector.shape_cast %170 : vector<1x1xf32> to vector<1x1xf32>
    %174 = vector.broadcast %173 : vector<1x1xf32> to vector<1x128xf32>
    %175 = arith.select %172, %174, %146 : vector<1x128xi1>, vector<1x128xf32>
    %176 = vector.broadcast %170 : vector<1x1xf32> to vector<1x128xf32>
    %177 = arith.cmpf oeq, %168, %176 : vector<1x128xf32>
    %c128_i32_37 = arith.constant 128 : i32
    %178 = vector.broadcast %c128_i32_37 : i32 to vector<1x128xi32>
    %179 = arith.select %177, %1, %178 : vector<1x128xi1>, vector<1x128xi32>
    %cst_38 = arith.constant dense<2147483647> : vector<1xi32>
    %180 = vector.multi_reduction <minsi>, %179, %cst_38 [1] : vector<1x128xi32> to vector<1xi32>
    %181 = vector.shape_cast %180 : vector<1xi32> to vector<1x1xi32>
    %182 = vector.broadcast %181 : vector<1x1xi32> to vector<8x128xi32>
    %183 = arith.cmpi eq, %2, %182 : vector<8x128xi32>
    %cst_39 = arith.constant 0.000000e+00 : f32
    %184 = vector.broadcast %cst_39 : f32 to vector<8x128xf32>
    %185 = arith.select %183, %0, %184 : vector<8x128xi1>, vector<8x128xf32>
    %cst_40 = arith.constant dense<0.000000e+00> : vector<8xf32>
    %186 = vector.multi_reduction <add>, %185, %cst_40 [1] : vector<8x128xf32> to vector<8xf32>
    %187 = vector.shape_cast %186 : vector<8xf32> to vector<8x1xf32>
    %188 = vector.broadcast %187 : vector<8x1xf32> to vector<8x128xf32>
    %189 = arith.subf %0, %188 : vector<8x128xf32>
    %190 = arith.mulf %189, %189 : vector<8x128xf32>
    %cst_41 = arith.constant dense<0.000000e+00> : vector<128xf32>
    %191 = vector.multi_reduction <add>, %190, %cst_41 [0] : vector<8x128xf32> to vector<128xf32>
    %192 = vector.shape_cast %191 : vector<128xf32> to vector<1x128xf32>
    %193 = vector.broadcast %181 : vector<1x1xi32> to vector<1x128xi32>
    %194 = arith.cmpi eq, %1, %193 : vector<1x128xi32>
    %195 = arith.select %194, %3, %166 : vector<1x128xi1>, vector<1x128xf32>
    %196 = arith.minimumf %168, %192 : vector<1x128xf32>
    %197 = arith.addf %196, %195 : vector<1x128xf32>
    %c6_i32 = arith.constant 6 : i32
    %cst_42 = arith.constant dense<0x7F800000> : vector<1xf32>
    %198 = vector.multi_reduction <minimumf>, %197, %cst_42 [1] : vector<1x128xf32> to vector<1xf32>
    %199 = vector.shape_cast %198 : vector<1xf32> to vector<1x1xf32>
    %200 = vector.broadcast %c6_i32 : i32 to vector<1x128xi32>
    %201 = arith.cmpi eq, %1, %200 : vector<1x128xi32>
    %202 = vector.shape_cast %199 : vector<1x1xf32> to vector<1x1xf32>
    %203 = vector.broadcast %202 : vector<1x1xf32> to vector<1x128xf32>
    %204 = arith.select %201, %203, %175 : vector<1x128xi1>, vector<1x128xf32>
    %205 = vector.broadcast %199 : vector<1x1xf32> to vector<1x128xf32>
    %206 = arith.cmpf oeq, %197, %205 : vector<1x128xf32>
    %c128_i32_43 = arith.constant 128 : i32
    %207 = vector.broadcast %c128_i32_43 : i32 to vector<1x128xi32>
    %208 = arith.select %206, %1, %207 : vector<1x128xi1>, vector<1x128xi32>
    %cst_44 = arith.constant dense<2147483647> : vector<1xi32>
    %209 = vector.multi_reduction <minsi>, %208, %cst_44 [1] : vector<1x128xi32> to vector<1xi32>
    %210 = vector.shape_cast %209 : vector<1xi32> to vector<1x1xi32>
    %211 = vector.broadcast %210 : vector<1x1xi32> to vector<8x128xi32>
    %212 = arith.cmpi eq, %2, %211 : vector<8x128xi32>
    %cst_45 = arith.constant 0.000000e+00 : f32
    %213 = vector.broadcast %cst_45 : f32 to vector<8x128xf32>
    %214 = arith.select %212, %0, %213 : vector<8x128xi1>, vector<8x128xf32>
    %cst_46 = arith.constant dense<0.000000e+00> : vector<8xf32>
    %215 = vector.multi_reduction <add>, %214, %cst_46 [1] : vector<8x128xf32> to vector<8xf32>
    %216 = vector.shape_cast %215 : vector<8xf32> to vector<8x1xf32>
    %217 = vector.broadcast %216 : vector<8x1xf32> to vector<8x128xf32>
    %218 = arith.subf %0, %217 : vector<8x128xf32>
    %219 = arith.mulf %218, %218 : vector<8x128xf32>
    %cst_47 = arith.constant dense<0.000000e+00> : vector<128xf32>
    %220 = vector.multi_reduction <add>, %219, %cst_47 [0] : vector<8x128xf32> to vector<128xf32>
    %221 = vector.shape_cast %220 : vector<128xf32> to vector<1x128xf32>
    %222 = vector.broadcast %210 : vector<1x1xi32> to vector<1x128xi32>
    %223 = arith.cmpi eq, %1, %222 : vector<1x128xi32>
    %224 = arith.select %223, %3, %195 : vector<1x128xi1>, vector<1x128xf32>
    %225 = arith.minimumf %197, %221 : vector<1x128xf32>
    %226 = arith.addf %225, %224 : vector<1x128xf32>
    %c7_i32 = arith.constant 7 : i32
    %cst_48 = arith.constant dense<0x7F800000> : vector<1xf32>
    %227 = vector.multi_reduction <minimumf>, %226, %cst_48 [1] : vector<1x128xf32> to vector<1xf32>
    %228 = vector.shape_cast %227 : vector<1xf32> to vector<1x1xf32>
    %229 = vector.broadcast %c7_i32 : i32 to vector<1x128xi32>
    %230 = arith.cmpi eq, %1, %229 : vector<1x128xi32>
    %231 = vector.shape_cast %228 : vector<1x1xf32> to vector<1x1xf32>
    %232 = vector.broadcast %231 : vector<1x1xf32> to vector<1x128xf32>
    %233 = arith.select %230, %232, %204 : vector<1x128xi1>, vector<1x128xf32>
    %234 = vector.broadcast %228 : vector<1x1xf32> to vector<1x128xf32>
    %235 = arith.cmpf oeq, %226, %234 : vector<1x128xf32>
    %c128_i32_49 = arith.constant 128 : i32
    %236 = vector.broadcast %c128_i32_49 : i32 to vector<1x128xi32>
    %237 = arith.select %235, %1, %236 : vector<1x128xi1>, vector<1x128xi32>
    %cst_50 = arith.constant dense<2147483647> : vector<1xi32>
    %238 = vector.multi_reduction <minsi>, %237, %cst_50 [1] : vector<1x128xi32> to vector<1xi32>
    %239 = vector.shape_cast %238 : vector<1xi32> to vector<1x1xi32>
    %240 = vector.broadcast %239 : vector<1x1xi32> to vector<8x128xi32>
    %241 = arith.cmpi eq, %2, %240 : vector<8x128xi32>
    %cst_51 = arith.constant 0.000000e+00 : f32
    %242 = vector.broadcast %cst_51 : f32 to vector<8x128xf32>
    %243 = arith.select %241, %0, %242 : vector<8x128xi1>, vector<8x128xf32>
    %cst_52 = arith.constant dense<0.000000e+00> : vector<8xf32>
    %244 = vector.multi_reduction <add>, %243, %cst_52 [1] : vector<8x128xf32> to vector<8xf32>
    %245 = vector.shape_cast %244 : vector<8xf32> to vector<8x1xf32>
    %246 = vector.broadcast %245 : vector<8x1xf32> to vector<8x128xf32>
    %247 = arith.subf %0, %246 : vector<8x128xf32>
    %248 = arith.mulf %247, %247 : vector<8x128xf32>
    %cst_53 = arith.constant dense<0.000000e+00> : vector<128xf32>
    %249 = vector.multi_reduction <add>, %248, %cst_53 [0] : vector<8x128xf32> to vector<128xf32>
    %250 = vector.shape_cast %249 : vector<128xf32> to vector<1x128xf32>
    %251 = vector.broadcast %239 : vector<1x1xi32> to vector<1x128xi32>
    %252 = arith.cmpi eq, %1, %251 : vector<1x128xi32>
    %253 = arith.select %252, %3, %224 : vector<1x128xi1>, vector<1x128xf32>
    %254 = arith.minimumf %226, %250 : vector<1x128xf32>
    %255 = arith.addf %254, %253 : vector<1x128xf32>
    %c8_i32 = arith.constant 8 : i32
    %cst_54 = arith.constant dense<0x7F800000> : vector<1xf32>
    %256 = vector.multi_reduction <minimumf>, %255, %cst_54 [1] : vector<1x128xf32> to vector<1xf32>
    %257 = vector.shape_cast %256 : vector<1xf32> to vector<1x1xf32>
    %258 = vector.broadcast %c8_i32 : i32 to vector<1x128xi32>
    %259 = arith.cmpi eq, %1, %258 : vector<1x128xi32>
    %260 = vector.shape_cast %257 : vector<1x1xf32> to vector<1x1xf32>
    %261 = vector.broadcast %260 : vector<1x1xf32> to vector<1x128xf32>
    %262 = arith.select %259, %261, %233 : vector<1x128xi1>, vector<1x128xf32>
    %263 = vector.broadcast %257 : vector<1x1xf32> to vector<1x128xf32>
    %264 = arith.cmpf oeq, %255, %263 : vector<1x128xf32>
    %c128_i32_55 = arith.constant 128 : i32
    %265 = vector.broadcast %c128_i32_55 : i32 to vector<1x128xi32>
    %266 = arith.select %264, %1, %265 : vector<1x128xi1>, vector<1x128xi32>
    %cst_56 = arith.constant dense<2147483647> : vector<1xi32>
    %267 = vector.multi_reduction <minsi>, %266, %cst_56 [1] : vector<1x128xi32> to vector<1xi32>
    %268 = vector.shape_cast %267 : vector<1xi32> to vector<1x1xi32>
    %269 = vector.broadcast %268 : vector<1x1xi32> to vector<8x128xi32>
    %270 = arith.cmpi eq, %2, %269 : vector<8x128xi32>
    %cst_57 = arith.constant 0.000000e+00 : f32
    %271 = vector.broadcast %cst_57 : f32 to vector<8x128xf32>
    %272 = arith.select %270, %0, %271 : vector<8x128xi1>, vector<8x128xf32>
    %cst_58 = arith.constant dense<0.000000e+00> : vector<8xf32>
    %273 = vector.multi_reduction <add>, %272, %cst_58 [1] : vector<8x128xf32> to vector<8xf32>
    %274 = vector.shape_cast %273 : vector<8xf32> to vector<8x1xf32>
    %275 = vector.broadcast %274 : vector<8x1xf32> to vector<8x128xf32>
    %276 = arith.subf %0, %275 : vector<8x128xf32>
    %277 = arith.mulf %276, %276 : vector<8x128xf32>
    %cst_59 = arith.constant dense<0.000000e+00> : vector<128xf32>
    %278 = vector.multi_reduction <add>, %277, %cst_59 [0] : vector<8x128xf32> to vector<128xf32>
    %279 = vector.shape_cast %278 : vector<128xf32> to vector<1x128xf32>
    %280 = vector.broadcast %268 : vector<1x1xi32> to vector<1x128xi32>
    %281 = arith.cmpi eq, %1, %280 : vector<1x128xi32>
    %282 = arith.select %281, %3, %253 : vector<1x128xi1>, vector<1x128xf32>
    %283 = arith.minimumf %255, %279 : vector<1x128xf32>
    %284 = arith.addf %283, %282 : vector<1x128xf32>
    %c9_i32 = arith.constant 9 : i32
    %cst_60 = arith.constant dense<0x7F800000> : vector<1xf32>
    %285 = vector.multi_reduction <minimumf>, %284, %cst_60 [1] : vector<1x128xf32> to vector<1xf32>
    %286 = vector.shape_cast %285 : vector<1xf32> to vector<1x1xf32>
    %287 = vector.broadcast %c9_i32 : i32 to vector<1x128xi32>
    %288 = arith.cmpi eq, %1, %287 : vector<1x128xi32>
    %289 = vector.shape_cast %286 : vector<1x1xf32> to vector<1x1xf32>
    %290 = vector.broadcast %289 : vector<1x1xf32> to vector<1x128xf32>
    %291 = arith.select %288, %290, %262 : vector<1x128xi1>, vector<1x128xf32>
    %292 = vector.broadcast %286 : vector<1x1xf32> to vector<1x128xf32>
    %293 = arith.cmpf oeq, %284, %292 : vector<1x128xf32>
    %c128_i32_61 = arith.constant 128 : i32
    %294 = vector.broadcast %c128_i32_61 : i32 to vector<1x128xi32>
    %295 = arith.select %293, %1, %294 : vector<1x128xi1>, vector<1x128xi32>
    %cst_62 = arith.constant dense<2147483647> : vector<1xi32>
    %296 = vector.multi_reduction <minsi>, %295, %cst_62 [1] : vector<1x128xi32> to vector<1xi32>
    %297 = vector.shape_cast %296 : vector<1xi32> to vector<1x1xi32>
    %298 = vector.broadcast %297 : vector<1x1xi32> to vector<8x128xi32>
    %299 = arith.cmpi eq, %2, %298 : vector<8x128xi32>
    %cst_63 = arith.constant 0.000000e+00 : f32
    %300 = vector.broadcast %cst_63 : f32 to vector<8x128xf32>
    %301 = arith.select %299, %0, %300 : vector<8x128xi1>, vector<8x128xf32>
    %cst_64 = arith.constant dense<0.000000e+00> : vector<8xf32>
    %302 = vector.multi_reduction <add>, %301, %cst_64 [1] : vector<8x128xf32> to vector<8xf32>
    %303 = vector.shape_cast %302 : vector<8xf32> to vector<8x1xf32>
    %304 = vector.broadcast %303 : vector<8x1xf32> to vector<8x128xf32>
    %305 = arith.subf %0, %304 : vector<8x128xf32>
    %306 = arith.mulf %305, %305 : vector<8x128xf32>
    %cst_65 = arith.constant dense<0.000000e+00> : vector<128xf32>
    %307 = vector.multi_reduction <add>, %306, %cst_65 [0] : vector<8x128xf32> to vector<128xf32>
    %308 = vector.shape_cast %307 : vector<128xf32> to vector<1x128xf32>
    %309 = vector.broadcast %297 : vector<1x1xi32> to vector<1x128xi32>
    %310 = arith.cmpi eq, %1, %309 : vector<1x128xi32>
    %311 = arith.select %310, %3, %282 : vector<1x128xi1>, vector<1x128xf32>
    %312 = arith.minimumf %284, %308 : vector<1x128xf32>
    %313 = arith.addf %312, %311 : vector<1x128xf32>
    %c10_i32 = arith.constant 10 : i32
    %cst_66 = arith.constant dense<0x7F800000> : vector<1xf32>
    %314 = vector.multi_reduction <minimumf>, %313, %cst_66 [1] : vector<1x128xf32> to vector<1xf32>
    %315 = vector.shape_cast %314 : vector<1xf32> to vector<1x1xf32>
    %316 = vector.broadcast %c10_i32 : i32 to vector<1x128xi32>
    %317 = arith.cmpi eq, %1, %316 : vector<1x128xi32>
    %318 = vector.shape_cast %315 : vector<1x1xf32> to vector<1x1xf32>
    %319 = vector.broadcast %318 : vector<1x1xf32> to vector<1x128xf32>
    %320 = arith.select %317, %319, %291 : vector<1x128xi1>, vector<1x128xf32>
    %321 = vector.broadcast %315 : vector<1x1xf32> to vector<1x128xf32>
    %322 = arith.cmpf oeq, %313, %321 : vector<1x128xf32>
    %c128_i32_67 = arith.constant 128 : i32
    %323 = vector.broadcast %c128_i32_67 : i32 to vector<1x128xi32>
    %324 = arith.select %322, %1, %323 : vector<1x128xi1>, vector<1x128xi32>
    %cst_68 = arith.constant dense<2147483647> : vector<1xi32>
    %325 = vector.multi_reduction <minsi>, %324, %cst_68 [1] : vector<1x128xi32> to vector<1xi32>
    %326 = vector.shape_cast %325 : vector<1xi32> to vector<1x1xi32>
    %327 = vector.broadcast %326 : vector<1x1xi32> to vector<8x128xi32>
    %328 = arith.cmpi eq, %2, %327 : vector<8x128xi32>
    %cst_69 = arith.constant 0.000000e+00 : f32
    %329 = vector.broadcast %cst_69 : f32 to vector<8x128xf32>
    %330 = arith.select %328, %0, %329 : vector<8x128xi1>, vector<8x128xf32>
    %cst_70 = arith.constant dense<0.000000e+00> : vector<8xf32>
    %331 = vector.multi_reduction <add>, %330, %cst_70 [1] : vector<8x128xf32> to vector<8xf32>
    %332 = vector.shape_cast %331 : vector<8xf32> to vector<8x1xf32>
    %333 = vector.broadcast %332 : vector<8x1xf32> to vector<8x128xf32>
    %334 = arith.subf %0, %333 : vector<8x128xf32>
    %335 = arith.mulf %334, %334 : vector<8x128xf32>
    %cst_71 = arith.constant dense<0.000000e+00> : vector<128xf32>
    %336 = vector.multi_reduction <add>, %335, %cst_71 [0] : vector<8x128xf32> to vector<128xf32>
    %337 = vector.shape_cast %336 : vector<128xf32> to vector<1x128xf32>
    %338 = vector.broadcast %326 : vector<1x1xi32> to vector<1x128xi32>
    %339 = arith.cmpi eq, %1, %338 : vector<1x128xi32>
    %340 = arith.select %339, %3, %311 : vector<1x128xi1>, vector<1x128xf32>
    %341 = arith.minimumf %313, %337 : vector<1x128xf32>
    %342 = arith.addf %341, %340 : vector<1x128xf32>
    %c11_i32 = arith.constant 11 : i32
    %cst_72 = arith.constant dense<0x7F800000> : vector<1xf32>
    %343 = vector.multi_reduction <minimumf>, %342, %cst_72 [1] : vector<1x128xf32> to vector<1xf32>
    %344 = vector.shape_cast %343 : vector<1xf32> to vector<1x1xf32>
    %345 = vector.broadcast %c11_i32 : i32 to vector<1x128xi32>
    %346 = arith.cmpi eq, %1, %345 : vector<1x128xi32>
    %347 = vector.shape_cast %344 : vector<1x1xf32> to vector<1x1xf32>
    %348 = vector.broadcast %347 : vector<1x1xf32> to vector<1x128xf32>
    %349 = arith.select %346, %348, %320 : vector<1x128xi1>, vector<1x128xf32>
    %350 = vector.broadcast %344 : vector<1x1xf32> to vector<1x128xf32>
    %351 = arith.cmpf oeq, %342, %350 : vector<1x128xf32>
    %c128_i32_73 = arith.constant 128 : i32
    %352 = vector.broadcast %c128_i32_73 : i32 to vector<1x128xi32>
    %353 = arith.select %351, %1, %352 : vector<1x128xi1>, vector<1x128xi32>
    %cst_74 = arith.constant dense<2147483647> : vector<1xi32>
    %354 = vector.multi_reduction <minsi>, %353, %cst_74 [1] : vector<1x128xi32> to vector<1xi32>
    %355 = vector.shape_cast %354 : vector<1xi32> to vector<1x1xi32>
    %356 = vector.broadcast %355 : vector<1x1xi32> to vector<8x128xi32>
    %357 = arith.cmpi eq, %2, %356 : vector<8x128xi32>
    %cst_75 = arith.constant 0.000000e+00 : f32
    %358 = vector.broadcast %cst_75 : f32 to vector<8x128xf32>
    %359 = arith.select %357, %0, %358 : vector<8x128xi1>, vector<8x128xf32>
    %cst_76 = arith.constant dense<0.000000e+00> : vector<8xf32>
    %360 = vector.multi_reduction <add>, %359, %cst_76 [1] : vector<8x128xf32> to vector<8xf32>
    %361 = vector.shape_cast %360 : vector<8xf32> to vector<8x1xf32>
    %362 = vector.broadcast %361 : vector<8x1xf32> to vector<8x128xf32>
    %363 = arith.subf %0, %362 : vector<8x128xf32>
    %364 = arith.mulf %363, %363 : vector<8x128xf32>
    %cst_77 = arith.constant dense<0.000000e+00> : vector<128xf32>
    %365 = vector.multi_reduction <add>, %364, %cst_77 [0] : vector<8x128xf32> to vector<128xf32>
    %366 = vector.shape_cast %365 : vector<128xf32> to vector<1x128xf32>
    %367 = vector.broadcast %355 : vector<1x1xi32> to vector<1x128xi32>
    %368 = arith.cmpi eq, %1, %367 : vector<1x128xi32>
    %369 = arith.select %368, %3, %340 : vector<1x128xi1>, vector<1x128xf32>
    %370 = arith.minimumf %342, %366 : vector<1x128xf32>
    %371 = arith.addf %370, %369 : vector<1x128xf32>
    %c12_i32 = arith.constant 12 : i32
    %cst_78 = arith.constant dense<0x7F800000> : vector<1xf32>
    %372 = vector.multi_reduction <minimumf>, %371, %cst_78 [1] : vector<1x128xf32> to vector<1xf32>
    %373 = vector.shape_cast %372 : vector<1xf32> to vector<1x1xf32>
    %374 = vector.broadcast %c12_i32 : i32 to vector<1x128xi32>
    %375 = arith.cmpi eq, %1, %374 : vector<1x128xi32>
    %376 = vector.shape_cast %373 : vector<1x1xf32> to vector<1x1xf32>
    %377 = vector.broadcast %376 : vector<1x1xf32> to vector<1x128xf32>
    %378 = arith.select %375, %377, %349 : vector<1x128xi1>, vector<1x128xf32>
    %379 = vector.broadcast %373 : vector<1x1xf32> to vector<1x128xf32>
    %380 = arith.cmpf oeq, %371, %379 : vector<1x128xf32>
    %c128_i32_79 = arith.constant 128 : i32
    %381 = vector.broadcast %c128_i32_79 : i32 to vector<1x128xi32>
    %382 = arith.select %380, %1, %381 : vector<1x128xi1>, vector<1x128xi32>
    %cst_80 = arith.constant dense<2147483647> : vector<1xi32>
    %383 = vector.multi_reduction <minsi>, %382, %cst_80 [1] : vector<1x128xi32> to vector<1xi32>
    %384 = vector.shape_cast %383 : vector<1xi32> to vector<1x1xi32>
    %385 = vector.broadcast %384 : vector<1x1xi32> to vector<8x128xi32>
    %386 = arith.cmpi eq, %2, %385 : vector<8x128xi32>
    %cst_81 = arith.constant 0.000000e+00 : f32
    %387 = vector.broadcast %cst_81 : f32 to vector<8x128xf32>
    %388 = arith.select %386, %0, %387 : vector<8x128xi1>, vector<8x128xf32>
    %cst_82 = arith.constant dense<0.000000e+00> : vector<8xf32>
    %389 = vector.multi_reduction <add>, %388, %cst_82 [1] : vector<8x128xf32> to vector<8xf32>
    %390 = vector.shape_cast %389 : vector<8xf32> to vector<8x1xf32>
    %391 = vector.broadcast %390 : vector<8x1xf32> to vector<8x128xf32>
    %392 = arith.subf %0, %391 : vector<8x128xf32>
    %393 = arith.mulf %392, %392 : vector<8x128xf32>
    %cst_83 = arith.constant dense<0.000000e+00> : vector<128xf32>
    %394 = vector.multi_reduction <add>, %393, %cst_83 [0] : vector<8x128xf32> to vector<128xf32>
    %395 = vector.shape_cast %394 : vector<128xf32> to vector<1x128xf32>
    %396 = vector.broadcast %384 : vector<1x1xi32> to vector<1x128xi32>
    %397 = arith.cmpi eq, %1, %396 : vector<1x128xi32>
    %398 = arith.select %397, %3, %369 : vector<1x128xi1>, vector<1x128xf32>
    %399 = arith.minimumf %371, %395 : vector<1x128xf32>
    %400 = arith.addf %399, %398 : vector<1x128xf32>
    %c13_i32 = arith.constant 13 : i32
    %cst_84 = arith.constant dense<0x7F800000> : vector<1xf32>
    %401 = vector.multi_reduction <minimumf>, %400, %cst_84 [1] : vector<1x128xf32> to vector<1xf32>
    %402 = vector.shape_cast %401 : vector<1xf32> to vector<1x1xf32>
    %403 = vector.broadcast %c13_i32 : i32 to vector<1x128xi32>
    %404 = arith.cmpi eq, %1, %403 : vector<1x128xi32>
    %405 = vector.shape_cast %402 : vector<1x1xf32> to vector<1x1xf32>
    %406 = vector.broadcast %405 : vector<1x1xf32> to vector<1x128xf32>
    %407 = arith.select %404, %406, %378 : vector<1x128xi1>, vector<1x128xf32>
    %408 = vector.broadcast %402 : vector<1x1xf32> to vector<1x128xf32>
    %409 = arith.cmpf oeq, %400, %408 : vector<1x128xf32>
    %c128_i32_85 = arith.constant 128 : i32
    %410 = vector.broadcast %c128_i32_85 : i32 to vector<1x128xi32>
    %411 = arith.select %409, %1, %410 : vector<1x128xi1>, vector<1x128xi32>
    %cst_86 = arith.constant dense<2147483647> : vector<1xi32>
    %412 = vector.multi_reduction <minsi>, %411, %cst_86 [1] : vector<1x128xi32> to vector<1xi32>
    %413 = vector.shape_cast %412 : vector<1xi32> to vector<1x1xi32>
    %414 = vector.broadcast %413 : vector<1x1xi32> to vector<8x128xi32>
    %415 = arith.cmpi eq, %2, %414 : vector<8x128xi32>
    %cst_87 = arith.constant 0.000000e+00 : f32
    %416 = vector.broadcast %cst_87 : f32 to vector<8x128xf32>
    %417 = arith.select %415, %0, %416 : vector<8x128xi1>, vector<8x128xf32>
    %cst_88 = arith.constant dense<0.000000e+00> : vector<8xf32>
    %418 = vector.multi_reduction <add>, %417, %cst_88 [1] : vector<8x128xf32> to vector<8xf32>
    %419 = vector.shape_cast %418 : vector<8xf32> to vector<8x1xf32>
    %420 = vector.broadcast %419 : vector<8x1xf32> to vector<8x128xf32>
    %421 = arith.subf %0, %420 : vector<8x128xf32>
    %422 = arith.mulf %421, %421 : vector<8x128xf32>
    %cst_89 = arith.constant dense<0.000000e+00> : vector<128xf32>
    %423 = vector.multi_reduction <add>, %422, %cst_89 [0] : vector<8x128xf32> to vector<128xf32>
    %424 = vector.shape_cast %423 : vector<128xf32> to vector<1x128xf32>
    %425 = vector.broadcast %413 : vector<1x1xi32> to vector<1x128xi32>
    %426 = arith.cmpi eq, %1, %425 : vector<1x128xi32>
    %427 = arith.select %426, %3, %398 : vector<1x128xi1>, vector<1x128xf32>
    %428 = arith.minimumf %400, %424 : vector<1x128xf32>
    %429 = arith.addf %428, %427 : vector<1x128xf32>
    %c14_i32 = arith.constant 14 : i32
    %cst_90 = arith.constant dense<0x7F800000> : vector<1xf32>
    %430 = vector.multi_reduction <minimumf>, %429, %cst_90 [1] : vector<1x128xf32> to vector<1xf32>
    %431 = vector.shape_cast %430 : vector<1xf32> to vector<1x1xf32>
    %432 = vector.broadcast %c14_i32 : i32 to vector<1x128xi32>
    %433 = arith.cmpi eq, %1, %432 : vector<1x128xi32>
    %434 = vector.shape_cast %431 : vector<1x1xf32> to vector<1x1xf32>
    %435 = vector.broadcast %434 : vector<1x1xf32> to vector<1x128xf32>
    %436 = arith.select %433, %435, %407 : vector<1x128xi1>, vector<1x128xf32>
    %437 = vector.broadcast %431 : vector<1x1xf32> to vector<1x128xf32>
    %438 = arith.cmpf oeq, %429, %437 : vector<1x128xf32>
    %c128_i32_91 = arith.constant 128 : i32
    %439 = vector.broadcast %c128_i32_91 : i32 to vector<1x128xi32>
    %440 = arith.select %438, %1, %439 : vector<1x128xi1>, vector<1x128xi32>
    %cst_92 = arith.constant dense<2147483647> : vector<1xi32>
    %441 = vector.multi_reduction <minsi>, %440, %cst_92 [1] : vector<1x128xi32> to vector<1xi32>
    %442 = vector.shape_cast %441 : vector<1xi32> to vector<1x1xi32>
    %443 = vector.broadcast %442 : vector<1x1xi32> to vector<8x128xi32>
    %444 = arith.cmpi eq, %2, %443 : vector<8x128xi32>
    %cst_93 = arith.constant 0.000000e+00 : f32
    %445 = vector.broadcast %cst_93 : f32 to vector<8x128xf32>
    %446 = arith.select %444, %0, %445 : vector<8x128xi1>, vector<8x128xf32>
    %cst_94 = arith.constant dense<0.000000e+00> : vector<8xf32>
    %447 = vector.multi_reduction <add>, %446, %cst_94 [1] : vector<8x128xf32> to vector<8xf32>
    %448 = vector.shape_cast %447 : vector<8xf32> to vector<8x1xf32>
    %449 = vector.broadcast %448 : vector<8x1xf32> to vector<8x128xf32>
    %450 = arith.subf %0, %449 : vector<8x128xf32>
    %451 = arith.mulf %450, %450 : vector<8x128xf32>
    %cst_95 = arith.constant dense<0.000000e+00> : vector<128xf32>
    %452 = vector.multi_reduction <add>, %451, %cst_95 [0] : vector<8x128xf32> to vector<128xf32>
    %453 = vector.shape_cast %452 : vector<128xf32> to vector<1x128xf32>
    %454 = vector.broadcast %442 : vector<1x1xi32> to vector<1x128xi32>
    %455 = arith.cmpi eq, %1, %454 : vector<1x128xi32>
    %456 = arith.select %455, %3, %427 : vector<1x128xi1>, vector<1x128xf32>
    %457 = arith.minimumf %429, %453 : vector<1x128xf32>
    %458 = arith.addf %457, %456 : vector<1x128xf32>
    %c15_i32 = arith.constant 15 : i32
    %cst_96 = arith.constant dense<0x7F800000> : vector<1xf32>
    %459 = vector.multi_reduction <minimumf>, %458, %cst_96 [1] : vector<1x128xf32> to vector<1xf32>
    %460 = vector.shape_cast %459 : vector<1xf32> to vector<1x1xf32>
    %461 = vector.broadcast %c15_i32 : i32 to vector<1x128xi32>
    %462 = arith.cmpi eq, %1, %461 : vector<1x128xi32>
    %463 = vector.shape_cast %460 : vector<1x1xf32> to vector<1x1xf32>
    %464 = vector.broadcast %463 : vector<1x1xf32> to vector<1x128xf32>
    %465 = arith.select %462, %464, %436 : vector<1x128xi1>, vector<1x128xf32>
    %466 = vector.broadcast %460 : vector<1x1xf32> to vector<1x128xf32>
    %467 = arith.cmpf oeq, %458, %466 : vector<1x128xf32>
    %c128_i32_97 = arith.constant 128 : i32
    %468 = vector.broadcast %c128_i32_97 : i32 to vector<1x128xi32>
    %469 = arith.select %467, %1, %468 : vector<1x128xi1>, vector<1x128xi32>
    %cst_98 = arith.constant dense<2147483647> : vector<1xi32>
    %470 = vector.multi_reduction <minsi>, %469, %cst_98 [1] : vector<1x128xi32> to vector<1xi32>
    %471 = vector.shape_cast %470 : vector<1xi32> to vector<1x1xi32>
    %472 = vector.broadcast %471 : vector<1x1xi32> to vector<8x128xi32>
    %473 = arith.cmpi eq, %2, %472 : vector<8x128xi32>
    %cst_99 = arith.constant 0.000000e+00 : f32
    %474 = vector.broadcast %cst_99 : f32 to vector<8x128xf32>
    %475 = arith.select %473, %0, %474 : vector<8x128xi1>, vector<8x128xf32>
    %cst_100 = arith.constant dense<0.000000e+00> : vector<8xf32>
    %476 = vector.multi_reduction <add>, %475, %cst_100 [1] : vector<8x128xf32> to vector<8xf32>
    %477 = vector.shape_cast %476 : vector<8xf32> to vector<8x1xf32>
    %478 = vector.broadcast %477 : vector<8x1xf32> to vector<8x128xf32>
    %479 = arith.subf %0, %478 : vector<8x128xf32>
    %480 = arith.mulf %479, %479 : vector<8x128xf32>
    %cst_101 = arith.constant dense<0.000000e+00> : vector<128xf32>
    %481 = vector.multi_reduction <add>, %480, %cst_101 [0] : vector<8x128xf32> to vector<128xf32>
    %482 = vector.shape_cast %481 : vector<128xf32> to vector<1x128xf32>
    %483 = vector.broadcast %471 : vector<1x1xi32> to vector<1x128xi32>
    %484 = arith.cmpi eq, %1, %483 : vector<1x128xi32>
    %485 = arith.select %484, %3, %456 : vector<1x128xi1>, vector<1x128xf32>
    %486 = arith.minimumf %458, %482 : vector<1x128xf32>
    %487 = arith.addf %486, %485 : vector<1x128xf32>
    %c16_i32 = arith.constant 16 : i32
    %cst_102 = arith.constant dense<0x7F800000> : vector<1xf32>
    %488 = vector.multi_reduction <minimumf>, %487, %cst_102 [1] : vector<1x128xf32> to vector<1xf32>
    %489 = vector.shape_cast %488 : vector<1xf32> to vector<1x1xf32>
    %490 = vector.broadcast %c16_i32 : i32 to vector<1x128xi32>
    %491 = arith.cmpi eq, %1, %490 : vector<1x128xi32>
    %492 = vector.shape_cast %489 : vector<1x1xf32> to vector<1x1xf32>
    %493 = vector.broadcast %492 : vector<1x1xf32> to vector<1x128xf32>
    %494 = arith.select %491, %493, %465 : vector<1x128xi1>, vector<1x128xf32>
    %495 = vector.broadcast %489 : vector<1x1xf32> to vector<1x128xf32>
    %496 = arith.cmpf oeq, %487, %495 : vector<1x128xf32>
    %c128_i32_103 = arith.constant 128 : i32
    %497 = vector.broadcast %c128_i32_103 : i32 to vector<1x128xi32>
    %498 = arith.select %496, %1, %497 : vector<1x128xi1>, vector<1x128xi32>
    %cst_104 = arith.constant dense<2147483647> : vector<1xi32>
    %499 = vector.multi_reduction <minsi>, %498, %cst_104 [1] : vector<1x128xi32> to vector<1xi32>
    %500 = vector.shape_cast %499 : vector<1xi32> to vector<1x1xi32>
    %501 = vector.broadcast %500 : vector<1x1xi32> to vector<8x128xi32>
    %502 = arith.cmpi eq, %2, %501 : vector<8x128xi32>
    %cst_105 = arith.constant 0.000000e+00 : f32
    %503 = vector.broadcast %cst_105 : f32 to vector<8x128xf32>
    %504 = arith.select %502, %0, %503 : vector<8x128xi1>, vector<8x128xf32>
    %cst_106 = arith.constant dense<0.000000e+00> : vector<8xf32>
    %505 = vector.multi_reduction <add>, %504, %cst_106 [1] : vector<8x128xf32> to vector<8xf32>
    %506 = vector.shape_cast %505 : vector<8xf32> to vector<8x1xf32>
    %507 = vector.broadcast %506 : vector<8x1xf32> to vector<8x128xf32>
    %508 = arith.subf %0, %507 : vector<8x128xf32>
    %509 = arith.mulf %508, %508 : vector<8x128xf32>
    %cst_107 = arith.constant dense<0.000000e+00> : vector<128xf32>
    %510 = vector.multi_reduction <add>, %509, %cst_107 [0] : vector<8x128xf32> to vector<128xf32>
    %511 = vector.shape_cast %510 : vector<128xf32> to vector<1x128xf32>
    %512 = vector.broadcast %500 : vector<1x1xi32> to vector<1x128xi32>
    %513 = arith.cmpi eq, %1, %512 : vector<1x128xi32>
    %514 = arith.select %513, %3, %485 : vector<1x128xi1>, vector<1x128xf32>
    %515 = arith.minimumf %487, %511 : vector<1x128xf32>
    %516 = arith.addf %515, %514 : vector<1x128xf32>
    %c17_i32 = arith.constant 17 : i32
    %cst_108 = arith.constant dense<0x7F800000> : vector<1xf32>
    %517 = vector.multi_reduction <minimumf>, %516, %cst_108 [1] : vector<1x128xf32> to vector<1xf32>
    %518 = vector.shape_cast %517 : vector<1xf32> to vector<1x1xf32>
    %519 = vector.broadcast %c17_i32 : i32 to vector<1x128xi32>
    %520 = arith.cmpi eq, %1, %519 : vector<1x128xi32>
    %521 = vector.shape_cast %518 : vector<1x1xf32> to vector<1x1xf32>
    %522 = vector.broadcast %521 : vector<1x1xf32> to vector<1x128xf32>
    %523 = arith.select %520, %522, %494 : vector<1x128xi1>, vector<1x128xf32>
    %524 = vector.broadcast %518 : vector<1x1xf32> to vector<1x128xf32>
    %525 = arith.cmpf oeq, %516, %524 : vector<1x128xf32>
    %c128_i32_109 = arith.constant 128 : i32
    %526 = vector.broadcast %c128_i32_109 : i32 to vector<1x128xi32>
    %527 = arith.select %525, %1, %526 : vector<1x128xi1>, vector<1x128xi32>
    %cst_110 = arith.constant dense<2147483647> : vector<1xi32>
    %528 = vector.multi_reduction <minsi>, %527, %cst_110 [1] : vector<1x128xi32> to vector<1xi32>
    %529 = vector.shape_cast %528 : vector<1xi32> to vector<1x1xi32>
    %530 = vector.broadcast %529 : vector<1x1xi32> to vector<8x128xi32>
    %531 = arith.cmpi eq, %2, %530 : vector<8x128xi32>
    %cst_111 = arith.constant 0.000000e+00 : f32
    %532 = vector.broadcast %cst_111 : f32 to vector<8x128xf32>
    %533 = arith.select %531, %0, %532 : vector<8x128xi1>, vector<8x128xf32>
    %cst_112 = arith.constant dense<0.000000e+00> : vector<8xf32>
    %534 = vector.multi_reduction <add>, %533, %cst_112 [1] : vector<8x128xf32> to vector<8xf32>
    %535 = vector.shape_cast %534 : vector<8xf32> to vector<8x1xf32>
    %536 = vector.broadcast %535 : vector<8x1xf32> to vector<8x128xf32>
    %537 = arith.subf %0, %536 : vector<8x128xf32>
    %538 = arith.mulf %537, %537 : vector<8x128xf32>
    %cst_113 = arith.constant dense<0.000000e+00> : vector<128xf32>
    %539 = vector.multi_reduction <add>, %538, %cst_113 [0] : vector<8x128xf32> to vector<128xf32>
    %540 = vector.shape_cast %539 : vector<128xf32> to vector<1x128xf32>
    %541 = vector.broadcast %529 : vector<1x1xi32> to vector<1x128xi32>
    %542 = arith.cmpi eq, %1, %541 : vector<1x128xi32>
    %543 = arith.select %542, %3, %514 : vector<1x128xi1>, vector<1x128xf32>
    %544 = arith.minimumf %516, %540 : vector<1x128xf32>
    %545 = arith.addf %544, %543 : vector<1x128xf32>
    %c18_i32 = arith.constant 18 : i32
    %cst_114 = arith.constant dense<0x7F800000> : vector<1xf32>
    %546 = vector.multi_reduction <minimumf>, %545, %cst_114 [1] : vector<1x128xf32> to vector<1xf32>
    %547 = vector.shape_cast %546 : vector<1xf32> to vector<1x1xf32>
    %548 = vector.broadcast %c18_i32 : i32 to vector<1x128xi32>
    %549 = arith.cmpi eq, %1, %548 : vector<1x128xi32>
    %550 = vector.shape_cast %547 : vector<1x1xf32> to vector<1x1xf32>
    %551 = vector.broadcast %550 : vector<1x1xf32> to vector<1x128xf32>
    %552 = arith.select %549, %551, %523 : vector<1x128xi1>, vector<1x128xf32>
    %553 = vector.broadcast %547 : vector<1x1xf32> to vector<1x128xf32>
    %554 = arith.cmpf oeq, %545, %553 : vector<1x128xf32>
    %c128_i32_115 = arith.constant 128 : i32
    %555 = vector.broadcast %c128_i32_115 : i32 to vector<1x128xi32>
    %556 = arith.select %554, %1, %555 : vector<1x128xi1>, vector<1x128xi32>
    %cst_116 = arith.constant dense<2147483647> : vector<1xi32>
    %557 = vector.multi_reduction <minsi>, %556, %cst_116 [1] : vector<1x128xi32> to vector<1xi32>
    %558 = vector.shape_cast %557 : vector<1xi32> to vector<1x1xi32>
    %559 = vector.broadcast %558 : vector<1x1xi32> to vector<8x128xi32>
    %560 = arith.cmpi eq, %2, %559 : vector<8x128xi32>
    %cst_117 = arith.constant 0.000000e+00 : f32
    %561 = vector.broadcast %cst_117 : f32 to vector<8x128xf32>
    %562 = arith.select %560, %0, %561 : vector<8x128xi1>, vector<8x128xf32>
    %cst_118 = arith.constant dense<0.000000e+00> : vector<8xf32>
    %563 = vector.multi_reduction <add>, %562, %cst_118 [1] : vector<8x128xf32> to vector<8xf32>
    %564 = vector.shape_cast %563 : vector<8xf32> to vector<8x1xf32>
    %565 = vector.broadcast %564 : vector<8x1xf32> to vector<8x128xf32>
    %566 = arith.subf %0, %565 : vector<8x128xf32>
    %567 = arith.mulf %566, %566 : vector<8x128xf32>
    %cst_119 = arith.constant dense<0.000000e+00> : vector<128xf32>
    %568 = vector.multi_reduction <add>, %567, %cst_119 [0] : vector<8x128xf32> to vector<128xf32>
    %569 = vector.shape_cast %568 : vector<128xf32> to vector<1x128xf32>
    %570 = vector.broadcast %558 : vector<1x1xi32> to vector<1x128xi32>
    %571 = arith.cmpi eq, %1, %570 : vector<1x128xi32>
    %572 = arith.select %571, %3, %543 : vector<1x128xi1>, vector<1x128xf32>
    %573 = arith.minimumf %545, %569 : vector<1x128xf32>
    %574 = arith.addf %573, %572 : vector<1x128xf32>
    %c19_i32 = arith.constant 19 : i32
    %cst_120 = arith.constant dense<0x7F800000> : vector<1xf32>
    %575 = vector.multi_reduction <minimumf>, %574, %cst_120 [1] : vector<1x128xf32> to vector<1xf32>
    %576 = vector.shape_cast %575 : vector<1xf32> to vector<1x1xf32>
    %577 = vector.broadcast %c19_i32 : i32 to vector<1x128xi32>
    %578 = arith.cmpi eq, %1, %577 : vector<1x128xi32>
    %579 = vector.shape_cast %576 : vector<1x1xf32> to vector<1x1xf32>
    %580 = vector.broadcast %579 : vector<1x1xf32> to vector<1x128xf32>
    %581 = arith.select %578, %580, %552 : vector<1x128xi1>, vector<1x128xf32>
    %582 = vector.broadcast %576 : vector<1x1xf32> to vector<1x128xf32>
    %583 = arith.cmpf oeq, %574, %582 : vector<1x128xf32>
    %c128_i32_121 = arith.constant 128 : i32
    %584 = vector.broadcast %c128_i32_121 : i32 to vector<1x128xi32>
    %585 = arith.select %583, %1, %584 : vector<1x128xi1>, vector<1x128xi32>
    %cst_122 = arith.constant dense<2147483647> : vector<1xi32>
    %586 = vector.multi_reduction <minsi>, %585, %cst_122 [1] : vector<1x128xi32> to vector<1xi32>
    %587 = vector.shape_cast %586 : vector<1xi32> to vector<1x1xi32>
    %588 = vector.broadcast %587 : vector<1x1xi32> to vector<8x128xi32>
    %589 = arith.cmpi eq, %2, %588 : vector<8x128xi32>
    %cst_123 = arith.constant 0.000000e+00 : f32
    %590 = vector.broadcast %cst_123 : f32 to vector<8x128xf32>
    %591 = arith.select %589, %0, %590 : vector<8x128xi1>, vector<8x128xf32>
    %cst_124 = arith.constant dense<0.000000e+00> : vector<8xf32>
    %592 = vector.multi_reduction <add>, %591, %cst_124 [1] : vector<8x128xf32> to vector<8xf32>
    %593 = vector.shape_cast %592 : vector<8xf32> to vector<8x1xf32>
    %594 = vector.broadcast %593 : vector<8x1xf32> to vector<8x128xf32>
    %595 = arith.subf %0, %594 : vector<8x128xf32>
    %596 = arith.mulf %595, %595 : vector<8x128xf32>
    %cst_125 = arith.constant dense<0.000000e+00> : vector<128xf32>
    %597 = vector.multi_reduction <add>, %596, %cst_125 [0] : vector<8x128xf32> to vector<128xf32>
    %598 = vector.shape_cast %597 : vector<128xf32> to vector<1x128xf32>
    %599 = vector.broadcast %587 : vector<1x1xi32> to vector<1x128xi32>
    %600 = arith.cmpi eq, %1, %599 : vector<1x128xi32>
    %601 = arith.select %600, %3, %572 : vector<1x128xi1>, vector<1x128xf32>
    %602 = arith.minimumf %574, %598 : vector<1x128xf32>
    %603 = arith.addf %602, %601 : vector<1x128xf32>
    %c20_i32 = arith.constant 20 : i32
    %cst_126 = arith.constant dense<0x7F800000> : vector<1xf32>
    %604 = vector.multi_reduction <minimumf>, %603, %cst_126 [1] : vector<1x128xf32> to vector<1xf32>
    %605 = vector.shape_cast %604 : vector<1xf32> to vector<1x1xf32>
    %606 = vector.broadcast %c20_i32 : i32 to vector<1x128xi32>
    %607 = arith.cmpi eq, %1, %606 : vector<1x128xi32>
    %608 = vector.shape_cast %605 : vector<1x1xf32> to vector<1x1xf32>
    %609 = vector.broadcast %608 : vector<1x1xf32> to vector<1x128xf32>
    %610 = arith.select %607, %609, %581 : vector<1x128xi1>, vector<1x128xf32>
    %611 = vector.broadcast %605 : vector<1x1xf32> to vector<1x128xf32>
    %612 = arith.cmpf oeq, %603, %611 : vector<1x128xf32>
    %c128_i32_127 = arith.constant 128 : i32
    %613 = vector.broadcast %c128_i32_127 : i32 to vector<1x128xi32>
    %614 = arith.select %612, %1, %613 : vector<1x128xi1>, vector<1x128xi32>
    %cst_128 = arith.constant dense<2147483647> : vector<1xi32>
    %615 = vector.multi_reduction <minsi>, %614, %cst_128 [1] : vector<1x128xi32> to vector<1xi32>
    %616 = vector.shape_cast %615 : vector<1xi32> to vector<1x1xi32>
    %617 = vector.broadcast %616 : vector<1x1xi32> to vector<8x128xi32>
    %618 = arith.cmpi eq, %2, %617 : vector<8x128xi32>
    %cst_129 = arith.constant 0.000000e+00 : f32
    %619 = vector.broadcast %cst_129 : f32 to vector<8x128xf32>
    %620 = arith.select %618, %0, %619 : vector<8x128xi1>, vector<8x128xf32>
    %cst_130 = arith.constant dense<0.000000e+00> : vector<8xf32>
    %621 = vector.multi_reduction <add>, %620, %cst_130 [1] : vector<8x128xf32> to vector<8xf32>
    %622 = vector.shape_cast %621 : vector<8xf32> to vector<8x1xf32>
    %623 = vector.broadcast %622 : vector<8x1xf32> to vector<8x128xf32>
    %624 = arith.subf %0, %623 : vector<8x128xf32>
    %625 = arith.mulf %624, %624 : vector<8x128xf32>
    %cst_131 = arith.constant dense<0.000000e+00> : vector<128xf32>
    %626 = vector.multi_reduction <add>, %625, %cst_131 [0] : vector<8x128xf32> to vector<128xf32>
    %627 = vector.shape_cast %626 : vector<128xf32> to vector<1x128xf32>
    %628 = vector.broadcast %616 : vector<1x1xi32> to vector<1x128xi32>
    %629 = arith.cmpi eq, %1, %628 : vector<1x128xi32>
    %630 = arith.select %629, %3, %601 : vector<1x128xi1>, vector<1x128xf32>
    %631 = arith.minimumf %603, %627 : vector<1x128xf32>
    %632 = arith.addf %631, %630 : vector<1x128xf32>
    %c21_i32 = arith.constant 21 : i32
    %cst_132 = arith.constant dense<0x7F800000> : vector<1xf32>
    %633 = vector.multi_reduction <minimumf>, %632, %cst_132 [1] : vector<1x128xf32> to vector<1xf32>
    %634 = vector.shape_cast %633 : vector<1xf32> to vector<1x1xf32>
    %635 = vector.broadcast %c21_i32 : i32 to vector<1x128xi32>
    %636 = arith.cmpi eq, %1, %635 : vector<1x128xi32>
    %637 = vector.shape_cast %634 : vector<1x1xf32> to vector<1x1xf32>
    %638 = vector.broadcast %637 : vector<1x1xf32> to vector<1x128xf32>
    %639 = arith.select %636, %638, %610 : vector<1x128xi1>, vector<1x128xf32>
    %640 = vector.broadcast %634 : vector<1x1xf32> to vector<1x128xf32>
    %641 = arith.cmpf oeq, %632, %640 : vector<1x128xf32>
    %c128_i32_133 = arith.constant 128 : i32
    %642 = vector.broadcast %c128_i32_133 : i32 to vector<1x128xi32>
    %643 = arith.select %641, %1, %642 : vector<1x128xi1>, vector<1x128xi32>
    %cst_134 = arith.constant dense<2147483647> : vector<1xi32>
    %644 = vector.multi_reduction <minsi>, %643, %cst_134 [1] : vector<1x128xi32> to vector<1xi32>
    %645 = vector.shape_cast %644 : vector<1xi32> to vector<1x1xi32>
    %646 = vector.broadcast %645 : vector<1x1xi32> to vector<8x128xi32>
    %647 = arith.cmpi eq, %2, %646 : vector<8x128xi32>
    %cst_135 = arith.constant 0.000000e+00 : f32
    %648 = vector.broadcast %cst_135 : f32 to vector<8x128xf32>
    %649 = arith.select %647, %0, %648 : vector<8x128xi1>, vector<8x128xf32>
    %cst_136 = arith.constant dense<0.000000e+00> : vector<8xf32>
    %650 = vector.multi_reduction <add>, %649, %cst_136 [1] : vector<8x128xf32> to vector<8xf32>
    %651 = vector.shape_cast %650 : vector<8xf32> to vector<8x1xf32>
    %652 = vector.broadcast %651 : vector<8x1xf32> to vector<8x128xf32>
    %653 = arith.subf %0, %652 : vector<8x128xf32>
    %654 = arith.mulf %653, %653 : vector<8x128xf32>
    %cst_137 = arith.constant dense<0.000000e+00> : vector<128xf32>
    %655 = vector.multi_reduction <add>, %654, %cst_137 [0] : vector<8x128xf32> to vector<128xf32>
    %656 = vector.shape_cast %655 : vector<128xf32> to vector<1x128xf32>
    %657 = vector.broadcast %645 : vector<1x1xi32> to vector<1x128xi32>
    %658 = arith.cmpi eq, %1, %657 : vector<1x128xi32>
    %659 = arith.select %658, %3, %630 : vector<1x128xi1>, vector<1x128xf32>
    %660 = arith.minimumf %632, %656 : vector<1x128xf32>
    %661 = arith.addf %660, %659 : vector<1x128xf32>
    %c22_i32 = arith.constant 22 : i32
    %cst_138 = arith.constant dense<0x7F800000> : vector<1xf32>
    %662 = vector.multi_reduction <minimumf>, %661, %cst_138 [1] : vector<1x128xf32> to vector<1xf32>
    %663 = vector.shape_cast %662 : vector<1xf32> to vector<1x1xf32>
    %664 = vector.broadcast %c22_i32 : i32 to vector<1x128xi32>
    %665 = arith.cmpi eq, %1, %664 : vector<1x128xi32>
    %666 = vector.shape_cast %663 : vector<1x1xf32> to vector<1x1xf32>
    %667 = vector.broadcast %666 : vector<1x1xf32> to vector<1x128xf32>
    %668 = arith.select %665, %667, %639 : vector<1x128xi1>, vector<1x128xf32>
    %669 = vector.broadcast %663 : vector<1x1xf32> to vector<1x128xf32>
    %670 = arith.cmpf oeq, %661, %669 : vector<1x128xf32>
    %c128_i32_139 = arith.constant 128 : i32
    %671 = vector.broadcast %c128_i32_139 : i32 to vector<1x128xi32>
    %672 = arith.select %670, %1, %671 : vector<1x128xi1>, vector<1x128xi32>
    %cst_140 = arith.constant dense<2147483647> : vector<1xi32>
    %673 = vector.multi_reduction <minsi>, %672, %cst_140 [1] : vector<1x128xi32> to vector<1xi32>
    %674 = vector.shape_cast %673 : vector<1xi32> to vector<1x1xi32>
    %675 = vector.broadcast %674 : vector<1x1xi32> to vector<8x128xi32>
    %676 = arith.cmpi eq, %2, %675 : vector<8x128xi32>
    %cst_141 = arith.constant 0.000000e+00 : f32
    %677 = vector.broadcast %cst_141 : f32 to vector<8x128xf32>
    %678 = arith.select %676, %0, %677 : vector<8x128xi1>, vector<8x128xf32>
    %cst_142 = arith.constant dense<0.000000e+00> : vector<8xf32>
    %679 = vector.multi_reduction <add>, %678, %cst_142 [1] : vector<8x128xf32> to vector<8xf32>
    %680 = vector.shape_cast %679 : vector<8xf32> to vector<8x1xf32>
    %681 = vector.broadcast %680 : vector<8x1xf32> to vector<8x128xf32>
    %682 = arith.subf %0, %681 : vector<8x128xf32>
    %683 = arith.mulf %682, %682 : vector<8x128xf32>
    %cst_143 = arith.constant dense<0.000000e+00> : vector<128xf32>
    %684 = vector.multi_reduction <add>, %683, %cst_143 [0] : vector<8x128xf32> to vector<128xf32>
    %685 = vector.shape_cast %684 : vector<128xf32> to vector<1x128xf32>
    %686 = vector.broadcast %674 : vector<1x1xi32> to vector<1x128xi32>
    %687 = arith.cmpi eq, %1, %686 : vector<1x128xi32>
    %688 = arith.select %687, %3, %659 : vector<1x128xi1>, vector<1x128xf32>
    %689 = arith.minimumf %661, %685 : vector<1x128xf32>
    %690 = arith.addf %689, %688 : vector<1x128xf32>
    %c23_i32 = arith.constant 23 : i32
    %691 = math.sqrt %668 : vector<1x128xf32>
    %cst_144 = arith.constant 0x7F800000 : f32
    %692 = vector.broadcast %cst_144 : f32 to vector<1x128xf32>
    %693 = arith.cmpf ogt, %691, %692 : vector<1x128xf32>
    %694 = arith.select %693, %3, %691 : vector<1x128xi1>, vector<1x128xf32>
    %c0_145 = arith.constant 0 : index
    %c0_146 = arith.constant 0 : index
    %695 = vector.load %arg1[%c0_145, %c0_146] : memref<1x128xf32, #tpu.memory_space<vmem>>, vector<1x128xf32>
    tpu.vector_store %arg1[%c0_145, %c0_146], %694 {strides = array<i32>} : memref<1x128xf32, #tpu.memory_space<vmem>>, vector<1x128xf32>,
    return
  }
}

</mosaic_0001>

<bundles_post_ra>
// kernel: tpu_custom_call.1
= control target key start
LH: loop header
LB: loop body
LE: loop exit
PB: predicated region body
PF: predicated region fallthrough
CT: control target
= control target key end

     0   :  { %6 = vsyncpa [#allocation3], 0  ;;  %s1143_s0 = inlined_call_operand.hbm [shape: f32[8,128], index: 0, kind: input, shape index: {}]   ;;  %s1144_s1 = inlined_call_operand.hbm [shape: f32[1,128], index: 1, kind: output, shape index: {}]  }
   0x1   :  { %7 = vsyncpa [#allocation4], 0  ;;  %s892_s6 = smov [#allocation2]   ;;  %s844_s10 = scalar_lea.hbm %s1143_s0, 128 }
   0x2   :  { %s14_s7 = sshll.u32 %s892_s6, 4  ;;  %p845_p0 = scmp.ne.s32.totalorder %s1143_s0, %s844_s10  ;;  %s15_s7 = int_to_ptr.vmem [resolvable:$true] %s14_s7 }
   0x3   :  { %p848_p1 = scmp.lt.u32.totalorder %s844_s10, %s1143_s0 }
   0x5   :  { %p850_p2 = pnand %p848_p1, %p845_p0 }
   0x7   :  { %853 = shalt.err (!%p850_p2)
}
   0x8   :  { %s854_s15 = scalar_lea.vmem %s15_s7, 128  ;;  %p859_p4 = scmp.lt.s32.totalorder %s15_s7, %s15_s7 }
   0x9   :  { %p855_p3 = scmp.ne.s32.totalorder %s15_s7, %s854_s15  ;;  %p860_p5 = scmp.lt.s32.totalorder %s854_s15, %s854_s15 }
   0xb   :  { %p861_p6 = por %p860_p5, %p859_p4 }
   0xd   :  { %p862_p7 = pnand %p861_p6, %p855_p3 }
   0xf   :  { %865 = shalt.err (!%p862_p7)
}
  0x10   :  { %17 = dma.hbm_to_vmem [thread:$0]  %s1143_s0, 128, %s15_s7, [#allocation3]  }
  0x11   :  { %888 = dma.done.wait [#allocation3], 128  }
  0x12   :  { %889 = vsyncadd [#allocation3], 4294967168  ;;  %v22_v0 = vlaneseq  ;;  %v920_v2 = vld [vmem:[#allocation2] sm:$0xff]  ;;  %v893_v12 = vmov 0.0   ;;  %s894_s0 = smov [#allocation5]  }
  0x13   :  { %s829_s18 = sshll.u32 %s894_s0, 4  ;;  %s830_s18 = int_to_ptr.vmem [resolvable:$true] %s829_s18 }
  0x14   :  { %v917_v1 = vand.u32 127, %v22_v0  ;;  %s866_s19 = scalar_lea.vmem %s830_s18, 16  ;;  %s870_s20 = scalar_lea.vmem %s830_s18, 32 }
  0x15   :  { %p867_p8 = scmp.ne.s32.totalorder %s830_s18, %s866_s19  ;;  %p871_p9 = scmp.lt.s32.totalorder %s830_s18, %s830_s18 }
  0x16   :  { %vm24_vm0 = vcmp.eq.s32.totalorder %v917_v1, 0  ;;  %vm25_vm1 = vcmp.ge.s32.totalorder %v917_v1, 24  ;;  %p872_p10 = scmp.lt.s32.totalorder %s870_s20, %s866_s19 }
  0x17   :  { %v28_v3 = vsel %vm24_vm0, %v920_v2, 0.0  ;;  %vm26_vm2 = vmor %vm24_vm0, %vm25_vm1 }
  0x18   :  { %29 = vadd.xlane.f32.xlu0 %v28_v3  ;;  %v27_v13 = vsel %vm26_vm2, inf, %v893_v12  ;;  %p873_p11 = por %p872_p10, %p871_p9 }
  0x1a   :  { %p874_p12 = pnand %p873_p11, %p867_p8 }
  0xa5   :  { %v30_v4 = vpop.xlane.xlu0 %29 }
  0xa6   :  { %v31_v5 = vsub.f32 %v920_v2, %v30_v4 }
  0xa8   :  { %v32_v6 = vmul.f32 %v31_v5, %v31_v5 }
  0xaa   :  { %v33_v7 = vrot.slane %v32_v6, 4 }
  0xac   :  { %v34_v8 = vadd.f32 %v33_v7, %v32_v6 }
  0xae   :  { %v35_v9 = vrot.slane %v34_v8, 2 }
  0xb0   :  { %v36_v10 = vadd.f32 %v35_v9, %v34_v8 }
  0xb2   :  { %v37_v11 = vrot.slane %v36_v10, 1 }
  0xb4   :  { %v38_v14 = vadd.f32 %v37_v11, %v36_v10 }
  0xb6   :  { %v39_v15 = vadd.f32 %v38_v14, %v27_v13 }
  0xb8   :  { %40 = vmin.xlane.f32.xlu0 %v39_v15 }
 0x145   :  { %v929_v16 = vpop.xlane.xlu0 %40 }
 0x146   :  { %vm43_vm3 = vcmp.eq.f32.partialorder %v39_v15, %v929_v16 }
 0x147   :  { %v44_v17 = vsel %vm43_vm3, %v917_v1, 128 }
 0x148   :  { %v46_v18 = vshra.s32 %v44_v17, 16  ;;  %v45_v20 = vand.u32 65535, %v44_v17 }
 0x14a   :  { %v48_v19 = vcvt.s32.f32 %v46_v18  ;;  %v47_v22 = vcvt.s32.f32 %v45_v20 }
 0x14c   :  { %49 = vmin.xlane.f32.xlu1 %v48_v19 }
 0x1d9   :  { %v50_v21 = vpop.xlane.xlu1 %49 }
 0x1da   :  { %vm51_vm4 = vcmp.eq.f32.partialorder %v48_v19, %v50_v21  ;;  %v56_v24 = vcvt.f32.s32 %v50_v21 }
 0x1db   :  { %v52_v23 = vsel %vm51_vm4, %v47_v22, inf }
 0x1dc   :  { %53 = vmin.xlane.f32.xlu1 %v52_v23  ;;  %v57_v26 = vshll.u32 %v56_v24, 16 }
 0x269   :  { %v54_v25 = vpop.xlane.xlu1 %53 }
 0x26a   :  { %v55_v27 = vcvt.f32.s32 %v54_v25 }
 0x26c   :  { %v58_v28 = vadd.s32 %v57_v26, %v55_v27 }
 0x26e   :  { %vm59_vm5 = vcmp.eq.s32.totalorder %v917_v1, %v58_v28 }
 0x26f   :  { %v60_v29 = vsel %vm59_vm5, %v920_v2, 0.0  ;;  %v71_v40 = vsel %vm59_vm5, inf, %v27_v13 }
 0x270   :  { %61 = vadd.xlane.f32.xlu0 %v60_v29 }
 0x2fd   :  { %v62_v30 = vpop.xlane.xlu0 %61 }
 0x2fe   :  { %v63_v31 = vsub.f32 %v920_v2, %v62_v30 }
 0x300   :  { %v64_v32 = vmul.f32 %v63_v31, %v63_v31 }
 0x302   :  { %v65_v33 = vrot.slane %v64_v32, 4 }
 0x304   :  { %v66_v34 = vadd.f32 %v65_v33, %v64_v32 }
 0x306   :  { %v67_v35 = vrot.slane %v66_v34, 2 }
 0x308   :  { %v68_v36 = vadd.f32 %v67_v35, %v66_v34 }
 0x30a   :  { %v69_v37 = vrot.slane %v68_v36, 1 }
 0x30c   :  { %v70_v38 = vadd.f32 %v69_v37, %v68_v36 }
 0x30e   :  { %v72_v39 = vmin.f32 %v39_v15, %v70_v38 }
 0x310   :  { %v73_v41 = vadd.f32 %v72_v39, %v71_v40 }
 0x312   :  { %74 = vmin.xlane.f32.xlu1 %v73_v41 }
 0x39f   :  { %v936_v42 = vpop.xlane.xlu1 %74 }
 0x3a0   :  { %vm78_vm6 = vcmp.eq.f32.partialorder %v73_v41, %v936_v42 }
 0x3a1   :  { %v79_v43 = vsel %vm78_vm6, %v917_v1, 128 }
 0x3a2   :  { %v81_v44 = vshra.s32 %v79_v43, 16  ;;  %v80_v46 = vand.u32 65535, %v79_v43 }
 0x3a4   :  { %v83_v45 = vcvt.s32.f32 %v81_v44  ;;  %v82_v48 = vcvt.s32.f32 %v80_v46 }
 0x3a6   :  { %84 = vmin.xlane.f32.xlu0 %v83_v45 }
 0x433   :  { %v85_v47 = vpop.xlane.xlu0 %84 }
 0x434   :  { %vm86_vm7 = vcmp.eq.f32.partialorder %v83_v45, %v85_v47  ;;  %v91_v50 = vcvt.f32.s32 %v85_v47 }
 0x435   :  { %v87_v49 = vsel %vm86_vm7, %v82_v48, inf }
 0x436   :  { %88 = vmin.xlane.f32.xlu1 %v87_v49  ;;  %v92_v52 = vshll.u32 %v91_v50, 16 }
 0x4c3   :  { %v89_v51 = vpop.xlane.xlu1 %88 }
 0x4c4   :  { %v90_v53 = vcvt.f32.s32 %v89_v51 }
 0x4c6   :  { %v93_v54 = vadd.s32 %v92_v52, %v90_v53 }
 0x4c8   :  { %vm94_vm8 = vcmp.eq.s32.totalorder %v917_v1, %v93_v54 }
 0x4c9   :  { %v95_v55 = vsel %vm94_vm8, %v920_v2, 0.0  ;;  %v106_v4 = vsel %vm94_vm8, inf, %v71_v40 }
 0x4ca   :  { %96 = vadd.xlane.f32.xlu0 %v95_v55 }
 0x557   :  { %v97_v56 = vpop.xlane.xlu0 %96 }
 0x558   :  { %v98_v57 = vsub.f32 %v920_v2, %v97_v56 }
 0x55a   :  { %v99_v58 = vmul.f32 %v98_v57, %v98_v57 }
 0x55c   :  { %v100_v59 = vrot.slane %v99_v58, 4 }
 0x55e   :  { %v101_v60 = vadd.f32 %v100_v59, %v99_v58 }
 0x560   :  { %v102_v61 = vrot.slane %v101_v60, 2 }
 0x562   :  { %v103_v62 = vadd.f32 %v102_v61, %v101_v60 }
 0x564   :  { %v104_v63 = vrot.slane %v103_v62, 1 }
 0x566   :  { %v105_v0 = vadd.f32 %v104_v63, %v103_v62 }
 0x568   :  { %v107_v3 = vmin.f32 %v73_v41, %v105_v0 }
 0x56a   :  { %v108_v5 = vadd.f32 %v107_v3, %v106_v4 }
 0x56c   :  { %109 = vmin.xlane.f32.xlu1 %v108_v5 }
 0x5f9   :  { %v943_v6 = vpop.xlane.xlu1 %109 }
 0x5fa   :  { %vm113_vm9 = vcmp.eq.f32.partialorder %v108_v5, %v943_v6 }
 0x5fb   :  { %v114_v7 = vsel %vm113_vm9, %v917_v1, 128 }
 0x5fc   :  { %v116_v8 = vshra.s32 %v114_v7, 16  ;;  %v115_v10 = vand.u32 65535, %v114_v7 }
 0x5fe   :  { %v118_v9 = vcvt.s32.f32 %v116_v8  ;;  %v117_v12 = vcvt.s32.f32 %v115_v10 }
 0x600   :  { %119 = vmin.xlane.f32.xlu0 %v118_v9 }
 0x68d   :  { %v120_v11 = vpop.xlane.xlu0 %119 }
 0x68e   :  { %vm121_vm10 = vcmp.eq.f32.partialorder %v118_v9, %v120_v11  ;;  %v126_v14 = vcvt.f32.s32 %v120_v11 }
 0x68f   :  { %v122_v13 = vsel %vm121_vm10, %v117_v12, inf }
 0x690   :  { %123 = vmin.xlane.f32.xlu1 %v122_v13  ;;  %v127_v17 = vshll.u32 %v126_v14, 16 }
 0x71d   :  { %v124_v15 = vpop.xlane.xlu1 %123 }
 0x71e   :  { %v125_v18 = vcvt.f32.s32 %v124_v15 }
 0x720   :  { %v128_v19 = vadd.s32 %v127_v17, %v125_v18 }
 0x722   :  { %vm129_vm11 = vcmp.eq.s32.totalorder %v917_v1, %v128_v19 }
 0x723   :  { %v130_v20 = vsel %vm129_vm11, %v920_v2, 0.0  ;;  %v141_v31 = vsel %vm129_vm11, inf, %v106_v4 }
 0x724   :  { %131 = vadd.xlane.f32.xlu0 %v130_v20 }
 0x7b1   :  { %v132_v21 = vpop.xlane.xlu0 %131 }
 0x7b2   :  { %v133_v22 = vsub.f32 %v920_v2, %v132_v21 }
 0x7b4   :  { %v134_v23 = vmul.f32 %v133_v22, %v133_v22 }
 0x7b6   :  { %v135_v24 = vrot.slane %v134_v23, 4 }
 0x7b8   :  { %v136_v25 = vadd.f32 %v135_v24, %v134_v23 }
 0x7ba   :  { %v137_v26 = vrot.slane %v136_v25, 2 }
 0x7bc   :  { %v138_v27 = vadd.f32 %v137_v26, %v136_v25 }
 0x7be   :  { %v139_v28 = vrot.slane %v138_v27, 1 }
 0x7c0   :  { %v140_v29 = vadd.f32 %v139_v28, %v138_v27 }
 0x7c2   :  { %v142_v30 = vmin.f32 %v108_v5, %v140_v29 }
 0x7c4   :  { %v143_v32 = vadd.f32 %v142_v30, %v141_v31 }
 0x7c6   :  { %144 = vmin.xlane.f32.xlu1 %v143_v32 }
 0x853   :  { %v950_v33 = vpop.xlane.xlu1 %144 }
 0x854   :  { %vm148_vm12 = vcmp.eq.f32.partialorder %v143_v32, %v950_v33 }
 0x855   :  { %v149_v34 = vsel %vm148_vm12, %v917_v1, 128 }
 0x856   :  { %v151_v35 = vshra.s32 %v149_v34, 16  ;;  %v150_v37 = vand.u32 65535, %v149_v34 }
 0x858   :  { %v153_v36 = vcvt.s32.f32 %v151_v35  ;;  %v152_v39 = vcvt.s32.f32 %v150_v37 }
 0x85a   :  { %154 = vmin.xlane.f32.xlu0 %v153_v36 }
 0x8e7   :  { %v155_v38 = vpop.xlane.xlu0 %154 }
 0x8e8   :  { %vm156_vm13 = vcmp.eq.f32.partialorder %v153_v36, %v155_v38  ;;  %v161_v41 = vcvt.f32.s32 %v155_v38 }
 0x8e9   :  { %v157_v40 = vsel %vm156_vm13, %v152_v39, inf }
 0x8ea   :  { %158 = vmin.xlane.f32.xlu1 %v157_v40  ;;  %v162_v44 = vshll.u32 %v161_v41, 16 }
 0x977   :  { %v159_v43 = vpop.xlane.xlu1 %158 }
 0x978   :  { %v160_v45 = vcvt.f32.s32 %v159_v43 }
 0x97a   :  { %v163_v46 = vadd.s32 %v162_v44, %v160_v45 }
 0x97c   :  { %vm164_vm14 = vcmp.eq.s32.totalorder %v917_v1, %v163_v46 }
 0x97d   :  { %v165_v47 = vsel %vm164_vm14, %v920_v2, 0.0  ;;  %v176_v58 = vsel %vm164_vm14, inf, %v141_v31 }
 0x97e   :  { %166 = vadd.xlane.f32.xlu0 %v165_v47 }
 0xa0b   :  { %v167_v48 = vpop.xlane.xlu0 %166 }
 0xa0c   :  { %v168_v49 = vsub.f32 %v920_v2, %v167_v48 }
 0xa0e   :  { %v169_v50 = vmul.f32 %v168_v49, %v168_v49 }
 0xa10   :  { %v170_v51 = vrot.slane %v169_v50, 4 }
 0xa12   :  { %v171_v52 = vadd.f32 %v170_v51, %v169_v50 }
 0xa14   :  { %v172_v53 = vrot.slane %v171_v52, 2 }
 0xa16   :  { %v173_v54 = vadd.f32 %v172_v53, %v171_v52 }
 0xa18   :  { %v174_v55 = vrot.slane %v173_v54, 1 }
 0xa1a   :  { %v175_v56 = vadd.f32 %v174_v55, %v173_v54 }
 0xa1c   :  { %v177_v57 = vmin.f32 %v143_v32, %v175_v56 }
 0xa1e   :  { %v178_v59 = vadd.f32 %v177_v57, %v176_v58 }
 0xa20   :  { %179 = vmin.xlane.f32.xlu1 %v178_v59 }
 0xaad   :  { %v957_v60 = vpop.xlane.xlu1 %179 }
 0xaae   :  { %vm183_vm15 = vcmp.eq.f32.partialorder %v178_v59, %v957_v60 }
 0xaaf   :  { %v184_v61 = vsel %vm183_vm15, %v917_v1, 128 }
 0xab0   :  { %v186_v62 = vshra.s32 %v184_v61, 16  ;;  %v185_v0 = vand.u32 65535, %v184_v61 }
 0xab2   :  { %v188_v63 = vcvt.s32.f32 %v186_v62  ;;  %v187_v4 = vcvt.s32.f32 %v185_v0 }
 0xab4   :  { %189 = vmin.xlane.f32.xlu0 %v188_v63 }
 0xb41   :  { %v190_v3 = vpop.xlane.xlu0 %189 }
 0xb42   :  { %vm191_vm1 = vcmp.eq.f32.partialorder %v188_v63, %v190_v3  ;;  %v196_v7 = vcvt.f32.s32 %v190_v3 }
 0xb43   :  { %v192_v5 = vsel %vm191_vm1, %v187_v4, inf }
 0xb44   :  { %193 = vmin.xlane.f32.xlu1 %v192_v5  ;;  %v197_v9 = vshll.u32 %v196_v7, 16 }
 0xbd1   :  { %v194_v8 = vpop.xlane.xlu1 %193 }
 0xbd2   :  { %v195_v10 = vcvt.f32.s32 %v194_v8 }
 0xbd4   :  { %v198_v11 = vadd.s32 %v197_v9, %v195_v10 }
 0xbd6   :  { %vm199_vm2 = vcmp.eq.s32.totalorder %v917_v1, %v198_v11 }
 0xbd7   :  { %v200_v12 = vsel %vm199_vm2, %v920_v2, 0.0  ;;  %v211_v24 = vsel %vm199_vm2, inf, %v176_v58 }
 0xbd8   :  { %201 = vadd.xlane.f32.xlu0 %v200_v12 }
 0xc65   :  { %v202_v13 = vpop.xlane.xlu0 %201 }
 0xc66   :  { %v203_v14 = vsub.f32 %v920_v2, %v202_v13 }
 0xc68   :  { %v204_v15 = vmul.f32 %v203_v14, %v203_v14 }
 0xc6a   :  { %v205_v17 = vrot.slane %v204_v15, 4 }
 0xc6c   :  { %v206_v18 = vadd.f32 %v205_v17, %v204_v15 }
 0xc6e   :  { %v207_v19 = vrot.slane %v206_v18, 2 }
 0xc70   :  { %v208_v20 = vadd.f32 %v207_v19, %v206_v18 }
 0xc72   :  { %v209_v21 = vrot.slane %v208_v20, 1 }
 0xc74   :  { %v210_v22 = vadd.f32 %v209_v21, %v208_v20 }
 0xc76   :  { %v212_v23 = vmin.f32 %v178_v59, %v210_v22 }
 0xc78   :  { %v213_v25 = vadd.f32 %v212_v23, %v211_v24 }
 0xc7a   :  { %214 = vmin.xlane.f32.xlu1 %v213_v25 }
 0xd07   :  { %v964_v26 = vpop.xlane.xlu1 %214 }
 0xd08   :  { %vm218_vm3 = vcmp.eq.f32.partialorder %v213_v25, %v964_v26 }
 0xd09   :  { %v219_v27 = vsel %vm218_vm3, %v917_v1, 128 }
 0xd0a   :  { %v221_v28 = vshra.s32 %v219_v27, 16  ;;  %v220_v30 = vand.u32 65535, %v219_v27 }
 0xd0c   :  { %v223_v29 = vcvt.s32.f32 %v221_v28  ;;  %v222_v32 = vcvt.s32.f32 %v220_v30 }
 0xd0e   :  { %224 = vmin.xlane.f32.xlu0 %v223_v29 }
 0xd9b   :  { %v225_v31 = vpop.xlane.xlu0 %224 }
 0xd9c   :  { %vm226_vm4 = vcmp.eq.f32.partialorder %v223_v29, %v225_v31  ;;  %v231_v35 = vcvt.f32.s32 %v225_v31 }
 0xd9d   :  { %v227_v34 = vsel %vm226_vm4, %v222_v32, inf }
 0xd9e   :  { %228 = vmin.xlane.f32.xlu1 %v227_v34  ;;  %v232_v37 = vshll.u32 %v231_v35, 16 }
 0xe2b   :  { %v229_v36 = vpop.xlane.xlu1 %228 }
 0xe2c   :  { %v230_v38 = vcvt.f32.s32 %v229_v36 }
 0xe2e   :  { %v233_v39 = vadd.s32 %v232_v37, %v230_v38 }
 0xe30   :  { %vm234_vm5 = vcmp.eq.s32.totalorder %v917_v1, %v233_v39 }
 0xe31   :  { %v235_v40 = vsel %vm234_vm5, %v920_v2, 0.0  ;;  %v246_v52 = vsel %vm234_vm5, inf, %v211_v24 }
 0xe32   :  { %236 = vadd.xlane.f32.xlu0 %v235_v40 }
 0xebf   :  { %v237_v41 = vpop.xlane.xlu0 %236 }
 0xec0   :  { %v238_v43 = vsub.f32 %v920_v2, %v237_v41 }
 0xec2   :  { %v239_v44 = vmul.f32 %v238_v43, %v238_v43 }
 0xec4   :  { %v240_v45 = vrot.slane %v239_v44, 4 }
 0xec6   :  { %v241_v46 = vadd.f32 %v240_v45, %v239_v44 }
 0xec8   :  { %v242_v47 = vrot.slane %v241_v46, 2 }
 0xeca   :  { %v243_v48 = vadd.f32 %v242_v47, %v241_v46 }
 0xecc   :  { %v244_v49 = vrot.slane %v243_v48, 1 }
 0xece   :  { %v245_v50 = vadd.f32 %v244_v49, %v243_v48 }
 0xed0   :  { %v247_v51 = vmin.f32 %v213_v25, %v245_v50 }
 0xed2   :  { %v248_v53 = vadd.f32 %v247_v51, %v246_v52 }
 0xed4   :  { %249 = vmin.xlane.f32.xlu1 %v248_v53 }
 0xf61   :  { %v971_v54 = vpop.xlane.xlu1 %249 }
 0xf62   :  { %vm253_vm6 = vcmp.eq.f32.partialorder %v248_v53, %v971_v54 }
 0xf63   :  { %v254_v55 = vsel %vm253_vm6, %v917_v1, 128 }
 0xf64   :  { %v256_v56 = vshra.s32 %v254_v55, 16  ;;  %v255_v58 = vand.u32 65535, %v254_v55 }
 0xf66   :  { %v258_v57 = vcvt.s32.f32 %v256_v56  ;;  %v257_v61 = vcvt.s32.f32 %v255_v58 }
 0xf68   :  { %259 = vmin.xlane.f32.xlu0 %v258_v57 }
 0xff5   :  { %v260_v59 = vpop.xlane.xlu0 %259 }
 0xff6   :  { %vm261_vm7 = vcmp.eq.f32.partialorder %v258_v57, %v260_v59  ;;  %v266_v63 = vcvt.f32.s32 %v260_v59 }
 0xff7   :  { %v262_v62 = vsel %vm261_vm7, %v257_v61, inf }
 0xff8   :  { %263 = vmin.xlane.f32.xlu1 %v262_v62  ;;  %v267_v3 = vshll.u32 %v266_v63, 16 }
0x1085   :  { %v264_v0 = vpop.xlane.xlu1 %263 }
0x1086   :  { %v265_v4 = vcvt.f32.s32 %v264_v0 }
0x1088   :  { %v268_v5 = vadd.s32 %v267_v3, %v265_v4 }
0x108a   :  { %vm269_vm8 = vcmp.eq.s32.totalorder %v917_v1, %v268_v5 }
0x108b   :  { %v270_v7 = vsel %vm269_vm8, %v920_v2, 0.0  ;;  %v281_v19 = vsel %vm269_vm8, inf, %v246_v52 }
0x108c   :  { %271 = vadd.xlane.f32.xlu0 %v270_v7 }
0x1119   :  { %v272_v8 = vpop.xlane.xlu0 %271 }
0x111a   :  { %v273_v9 = vsub.f32 %v920_v2, %v272_v8 }
0x111c   :  { %v274_v10 = vmul.f32 %v273_v9, %v273_v9 }
0x111e   :  { %v275_v11 = vrot.slane %v274_v10, 4 }
0x1120   :  { %v276_v12 = vadd.f32 %v275_v11, %v274_v10 }
0x1122   :  { %v277_v13 = vrot.slane %v276_v12, 2 }
0x1124   :  { %v278_v14 = vadd.f32 %v277_v13, %v276_v12 }
0x1126   :  { %v279_v15 = vrot.slane %v278_v14, 1 }
0x1128   :  { %v280_v17 = vadd.f32 %v279_v15, %v278_v14 }
0x112a   :  { %v282_v18 = vmin.f32 %v248_v53, %v280_v17 }
0x112c   :  { %v283_v20 = vadd.f32 %v282_v18, %v281_v19 }
0x112e   :  { %284 = vmin.xlane.f32.xlu1 %v283_v20 }
0x11bb   :  { %v978_v21 = vpop.xlane.xlu1 %284 }
0x11bc   :  { %vm288_vm9 = vcmp.eq.f32.partialorder %v283_v20, %v978_v21 }
0x11bd   :  { %v289_v22 = vsel %vm288_vm9, %v917_v1, 128 }
0x11be   :  { %v291_v23 = vshra.s32 %v289_v22, 16  ;;  %v290_v25 = vand.u32 65535, %v289_v22 }
0x11c0   :  { %v293_v24 = vcvt.s32.f32 %v291_v23  ;;  %v292_v28 = vcvt.s32.f32 %v290_v25 }
0x11c2   :  { %294 = vmin.xlane.f32.xlu0 %v293_v24 }
0x124f   :  { %v295_v27 = vpop.xlane.xlu0 %294 }
0x1250   :  { %vm296_vm10 = vcmp.eq.f32.partialorder %v293_v24, %v295_v27  ;;  %v301_v30 = vcvt.f32.s32 %v295_v27 }
0x1251   :  { %v297_v29 = vsel %vm296_vm10, %v292_v28, inf }
0x1252   :  { %298 = vmin.xlane.f32.xlu1 %v297_v29  ;;  %v302_v32 = vshll.u32 %v301_v30, 16 }
0x12df   :  { %v299_v31 = vpop.xlane.xlu1 %298 }
0x12e0   :  { %v300_v34 = vcvt.f32.s32 %v299_v31 }
0x12e2   :  { %v303_v35 = vadd.s32 %v302_v32, %v300_v34 }
0x12e4   :  { %vm304_vm11 = vcmp.eq.s32.totalorder %v917_v1, %v303_v35 }
0x12e5   :  { %v305_v36 = vsel %vm304_vm11, %v920_v2, 0.0  ;;  %v316_v48 = vsel %vm304_vm11, inf, %v281_v19 }
0x12e6   :  { %306 = vadd.xlane.f32.xlu0 %v305_v36 }
0x1373   :  { %v307_v37 = vpop.xlane.xlu0 %306 }
0x1374   :  { %v308_v38 = vsub.f32 %v920_v2, %v307_v37 }
0x1376   :  { %v309_v39 = vmul.f32 %v308_v38, %v308_v38 }
0x1378   :  { %v310_v40 = vrot.slane %v309_v39, 4 }
0x137a   :  { %v311_v41 = vadd.f32 %v310_v40, %v309_v39 }
0x137c   :  { %v312_v43 = vrot.slane %v311_v41, 2 }
0x137e   :  { %v313_v44 = vadd.f32 %v312_v43, %v311_v41 }
0x1380   :  { %v314_v45 = vrot.slane %v313_v44, 1 }
0x1382   :  { %v315_v46 = vadd.f32 %v314_v45, %v313_v44 }
0x1384   :  { %v317_v47 = vmin.f32 %v283_v20, %v315_v46 }
0x1386   :  { %v318_v49 = vadd.f32 %v317_v47, %v316_v48 }
0x1388   :  { %319 = vmin.xlane.f32.xlu1 %v318_v49 }
0x1415   :  { %v985_v50 = vpop.xlane.xlu1 %319 }
0x1416   :  { %vm323_vm12 = vcmp.eq.f32.partialorder %v318_v49, %v985_v50 }
0x1417   :  { %v324_v51 = vsel %vm323_vm12, %v917_v1, 128 }
0x1418   :  { %v326_v52 = vshra.s32 %v324_v51, 16  ;;  %v325_v55 = vand.u32 65535, %v324_v51 }
0x141a   :  { %v328_v53 = vcvt.s32.f32 %v326_v52  ;;  %v327_v57 = vcvt.s32.f32 %v325_v55 }
0x141c   :  { %329 = vmin.xlane.f32.xlu0 %v328_v53 }
0x14a9   :  { %v330_v56 = vpop.xlane.xlu0 %329 }
0x14aa   :  { %vm331_vm13 = vcmp.eq.f32.partialorder %v328_v53, %v330_v56  ;;  %v336_v59 = vcvt.f32.s32 %v330_v56 }
0x14ab   :  { %v332_v58 = vsel %vm331_vm13, %v327_v57, inf }
0x14ac   :  { %333 = vmin.xlane.f32.xlu1 %v332_v58  ;;  %v337_v62 = vshll.u32 %v336_v59, 16 }
0x1539   :  { %v334_v61 = vpop.xlane.xlu1 %333 }
0x153a   :  { %v335_v63 = vcvt.f32.s32 %v334_v61 }
0x153c   :  { %v338_v0 = vadd.s32 %v337_v62, %v335_v63 }
0x153e   :  { %vm339_vm14 = vcmp.eq.s32.totalorder %v917_v1, %v338_v0 }
0x153f   :  { %v340_v3 = vsel %vm339_vm14, %v920_v2, 0.0  ;;  %v351_v15 = vsel %vm339_vm14, inf, %v316_v48 }
0x1540   :  { %341 = vadd.xlane.f32.xlu0 %v340_v3 }
0x15cd   :  { %v342_v4 = vpop.xlane.xlu0 %341 }
0x15ce   :  { %v343_v5 = vsub.f32 %v920_v2, %v342_v4 }
0x15d0   :  { %v344_v7 = vmul.f32 %v343_v5, %v343_v5 }
0x15d2   :  { %v345_v8 = vrot.slane %v344_v7, 4 }
0x15d4   :  { %v346_v9 = vadd.f32 %v345_v8, %v344_v7 }
0x15d6   :  { %v347_v10 = vrot.slane %v346_v9, 2 }
0x15d8   :  { %v348_v11 = vadd.f32 %v347_v10, %v346_v9 }
0x15da   :  { %v349_v12 = vrot.slane %v348_v11, 1 }
0x15dc   :  { %v350_v13 = vadd.f32 %v349_v12, %v348_v11 }
0x15de   :  { %v352_v14 = vmin.f32 %v318_v49, %v350_v13 }
0x15e0   :  { %v353_v17 = vadd.f32 %v352_v14, %v351_v15 }
0x15e2   :  { %354 = vmin.xlane.f32.xlu1 %v353_v17 }
0x166f   :  { %v992_v18 = vpop.xlane.xlu1 %354 }
0x1670   :  { %vm358_vm15 = vcmp.eq.f32.partialorder %v353_v17, %v992_v18 }
0x1671   :  { %v359_v19 = vsel %vm358_vm15, %v917_v1, 128 }
0x1672   :  { %v361_v20 = vshra.s32 %v359_v19, 16  ;;  %v360_v23 = vand.u32 65535, %v359_v19 }
0x1674   :  { %v363_v22 = vcvt.s32.f32 %v361_v20  ;;  %v362_v25 = vcvt.s32.f32 %v360_v23 }
0x1676   :  { %364 = vmin.xlane.f32.xlu0 %v363_v22 }
0x1703   :  { %v365_v24 = vpop.xlane.xlu0 %364 }
0x1704   :  { %vm366_vm1 = vcmp.eq.f32.partialorder %v363_v22, %v365_v24  ;;  %v371_v28 = vcvt.f32.s32 %v365_v24 }
0x1705   :  { %v367_v27 = vsel %vm366_vm1, %v362_v25, inf }
0x1706   :  { %368 = vmin.xlane.f32.xlu1 %v367_v27  ;;  %v372_v30 = vshll.u32 %v371_v28, 16 }
0x1793   :  { %v369_v29 = vpop.xlane.xlu1 %368 }
0x1794   :  { %v370_v31 = vcvt.f32.s32 %v369_v29 }
0x1796   :  { %v373_v32 = vadd.s32 %v372_v30, %v370_v31 }
0x1798   :  { %vm374_vm2 = vcmp.eq.s32.totalorder %v917_v1, %v373_v32 }
0x1799   :  { %v375_v34 = vsel %vm374_vm2, %v920_v2, 0.0  ;;  %v386_v46 = vsel %vm374_vm2, inf, %v351_v15 }
0x179a   :  { %376 = vadd.xlane.f32.xlu0 %v375_v34 }
0x1827   :  { %v377_v35 = vpop.xlane.xlu0 %376 }
0x1828   :  { %v378_v36 = vsub.f32 %v920_v2, %v377_v35 }
0x182a   :  { %v379_v37 = vmul.f32 %v378_v36, %v378_v36 }
0x182c   :  { %v380_v38 = vrot.slane %v379_v37, 4 }
0x182e   :  { %v381_v39 = vadd.f32 %v380_v38, %v379_v37 }
0x1830   :  { %v382_v40 = vrot.slane %v381_v39, 2 }
0x1832   :  { %v383_v41 = vadd.f32 %v382_v40, %v381_v39 }
0x1834   :  { %v384_v43 = vrot.slane %v383_v41, 1 }
0x1836   :  { %v385_v44 = vadd.f32 %v384_v43, %v383_v41 }
0x1838   :  { %v387_v45 = vmin.f32 %v353_v17, %v385_v44 }
0x183a   :  { %v388_v47 = vadd.f32 %v387_v45, %v386_v46 }
0x183c   :  { %389 = vmin.xlane.f32.xlu1 %v388_v47 }
0x18c9   :  { %v999_v48 = vpop.xlane.xlu1 %389 }
0x18ca   :  { %vm393_vm3 = vcmp.eq.f32.partialorder %v388_v47, %v999_v48 }
0x18cb   :  { %v394_v49 = vsel %vm393_vm3, %v917_v1, 128 }
0x18cc   :  { %v396_v51 = vshra.s32 %v394_v49, 16  ;;  %v395_v53 = vand.u32 65535, %v394_v49 }
0x18ce   :  { %v398_v52 = vcvt.s32.f32 %v396_v51  ;;  %v397_v56 = vcvt.s32.f32 %v395_v53 }
0x18d0   :  { %399 = vmin.xlane.f32.xlu0 %v398_v52 }
0x195d   :  { %v400_v55 = vpop.xlane.xlu0 %399 }
0x195e   :  { %vm401_vm4 = vcmp.eq.f32.partialorder %v398_v52, %v400_v55  ;;  %v406_v58 = vcvt.f32.s32 %v400_v55 }
0x195f   :  { %v402_v57 = vsel %vm401_vm4, %v397_v56, inf }
0x1960   :  { %403 = vmin.xlane.f32.xlu1 %v402_v57  ;;  %v407_v61 = vshll.u32 %v406_v58, 16 }
0x19ed   :  { %v404_v59 = vpop.xlane.xlu1 %403 }
0x19ee   :  { %v405_v62 = vcvt.f32.s32 %v404_v59 }
0x19f0   :  { %v408_v63 = vadd.s32 %v407_v61, %v405_v62 }
0x19f2   :  { %vm409_vm5 = vcmp.eq.s32.totalorder %v917_v1, %v408_v63 }
0x19f3   :  { %v410_v0 = vsel %vm409_vm5, %v920_v2, 0.0  ;;  %v421_v14 = vsel %vm409_vm5, inf, %v386_v46 }
0x19f4   :  { %411 = vadd.xlane.f32.xlu0 %v410_v0 }
0x1a81   :  { %v412_v3 = vpop.xlane.xlu0 %411 }
0x1a82   :  { %v413_v4 = vsub.f32 %v920_v2, %v412_v3 }
0x1a84   :  { %v414_v5 = vmul.f32 %v413_v4, %v413_v4 }
0x1a86   :  { %v415_v7 = vrot.slane %v414_v5, 4 }
0x1a88   :  { %v416_v8 = vadd.f32 %v415_v7, %v414_v5 }
0x1a8a   :  { %v417_v9 = vrot.slane %v416_v8, 2 }
0x1a8c   :  { %v418_v10 = vadd.f32 %v417_v9, %v416_v8 }
0x1a8e   :  { %v419_v11 = vrot.slane %v418_v10, 1 }
0x1a90   :  { %v420_v12 = vadd.f32 %v419_v11, %v418_v10 }
0x1a92   :  { %v422_v13 = vmin.f32 %v388_v47, %v420_v12 }
0x1a94   :  { %v423_v15 = vadd.f32 %v422_v13, %v421_v14 }
0x1a96   :  { %424 = vmin.xlane.f32.xlu1 %v423_v15 }
0x1b23   :  { %v1006_v17 = vpop.xlane.xlu1 %424 }
0x1b24   :  { %vm428_vm6 = vcmp.eq.f32.partialorder %v423_v15, %v1006_v17 }
0x1b25   :  { %v429_v19 = vsel %vm428_vm6, %v917_v1, 128 }
0x1b26   :  { %v431_v20 = vshra.s32 %v429_v19, 16  ;;  %v430_v23 = vand.u32 65535, %v429_v19 }
0x1b28   :  { %v433_v22 = vcvt.s32.f32 %v431_v20  ;;  %v432_v25 = vcvt.s32.f32 %v430_v23 }
0x1b2a   :  { %434 = vmin.xlane.f32.xlu0 %v433_v22 }
0x1bb7   :  { %v435_v24 = vpop.xlane.xlu0 %434 }
0x1bb8   :  { %vm436_vm7 = vcmp.eq.f32.partialorder %v433_v22, %v435_v24  ;;  %v441_v28 = vcvt.f32.s32 %v435_v24 }
0x1bb9   :  { %v437_v27 = vsel %vm436_vm7, %v432_v25, inf }
0x1bba   :  { %438 = vmin.xlane.f32.xlu1 %v437_v27  ;;  %v442_v30 = vshll.u32 %v441_v28, 16 }
0x1c47   :  { %v439_v29 = vpop.xlane.xlu1 %438 }
0x1c48   :  { %v440_v31 = vcvt.f32.s32 %v439_v29 }
0x1c4a   :  { %v443_v32 = vadd.s32 %v442_v30, %v440_v31 }
0x1c4c   :  { %vm444_vm8 = vcmp.eq.s32.totalorder %v917_v1, %v443_v32 }
0x1c4d   :  { %v445_v34 = vsel %vm444_vm8, %v920_v2, 0.0  ;;  %v456_v46 = vsel %vm444_vm8, inf, %v421_v14 }
0x1c4e   :  { %446 = vadd.xlane.f32.xlu0 %v445_v34 }
0x1cdb   :  { %v447_v35 = vpop.xlane.xlu0 %446 }
0x1cdc   :  { %v448_v36 = vsub.f32 %v920_v2, %v447_v35 }
0x1cde   :  { %v449_v37 = vmul.f32 %v448_v36, %v448_v36 }
0x1ce0   :  { %v450_v38 = vrot.slane %v449_v37, 4 }
0x1ce2   :  { %v451_v39 = vadd.f32 %v450_v38, %v449_v37 }
0x1ce4   :  { %v452_v40 = vrot.slane %v451_v39, 2 }
0x1ce6   :  { %v453_v41 = vadd.f32 %v452_v40, %v451_v39 }
0x1ce8   :  { %v454_v43 = vrot.slane %v453_v41, 1 }
0x1cea   :  { %v455_v44 = vadd.f32 %v454_v43, %v453_v41 }
0x1cec   :  { %v457_v45 = vmin.f32 %v423_v15, %v455_v44 }
0x1cee   :  { %v458_v47 = vadd.f32 %v457_v45, %v456_v46 }
0x1cf0   :  { %459 = vmin.xlane.f32.xlu1 %v458_v47 }
0x1d7d   :  { %v1013_v49 = vpop.xlane.xlu1 %459 }
0x1d7e   :  { %vm463_vm9 = vcmp.eq.f32.partialorder %v458_v47, %v1013_v49 }
0x1d7f   :  { %v464_v51 = vsel %vm463_vm9, %v917_v1, 128 }
0x1d80   :  { %v466_v52 = vshra.s32 %v464_v51, 16  ;;  %v465_v55 = vand.u32 65535, %v464_v51 }
0x1d82   :  { %v468_v53 = vcvt.s32.f32 %v466_v52  ;;  %v467_v57 = vcvt.s32.f32 %v465_v55 }
0x1d84   :  { %469 = vmin.xlane.f32.xlu0 %v468_v53 }
0x1e11   :  { %v470_v56 = vpop.xlane.xlu0 %469 }
0x1e12   :  { %vm471_vm10 = vcmp.eq.f32.partialorder %v468_v53, %v470_v56  ;;  %v476_v59 = vcvt.f32.s32 %v470_v56 }
0x1e13   :  { %v472_v58 = vsel %vm471_vm10, %v467_v57, inf }
0x1e14   :  { %473 = vmin.xlane.f32.xlu1 %v472_v58  ;;  %v477_v62 = vshll.u32 %v476_v59, 16 }
0x1ea1   :  { %v474_v61 = vpop.xlane.xlu1 %473 }
0x1ea2   :  { %v475_v63 = vcvt.f32.s32 %v474_v61 }
0x1ea4   :  { %v478_v0 = vadd.s32 %v477_v62, %v475_v63 }
0x1ea6   :  { %vm479_vm11 = vcmp.eq.s32.totalorder %v917_v1, %v478_v0 }
0x1ea7   :  { %v480_v3 = vsel %vm479_vm11, %v920_v2, 0.0  ;;  %v491_v15 = vsel %vm479_vm11, inf, %v456_v46 }
0x1ea8   :  { %481 = vadd.xlane.f32.xlu0 %v480_v3 }
0x1f35   :  { %v482_v4 = vpop.xlane.xlu0 %481 }
0x1f36   :  { %v483_v5 = vsub.f32 %v920_v2, %v482_v4 }
0x1f38   :  { %v484_v7 = vmul.f32 %v483_v5, %v483_v5 }
0x1f3a   :  { %v485_v8 = vrot.slane %v484_v7, 4 }
0x1f3c   :  { %v486_v9 = vadd.f32 %v485_v8, %v484_v7 }
0x1f3e   :  { %v487_v10 = vrot.slane %v486_v9, 2 }
0x1f40   :  { %v488_v11 = vadd.f32 %v487_v10, %v486_v9 }
0x1f42   :  { %v489_v12 = vrot.slane %v488_v11, 1 }
0x1f44   :  { %v490_v13 = vadd.f32 %v489_v12, %v488_v11 }
0x1f46   :  { %v492_v14 = vmin.f32 %v458_v47, %v490_v13 }
0x1f48   :  { %v493_v19 = vadd.f32 %v492_v14, %v491_v15 }
0x1f4a   :  { %494 = vmin.xlane.f32.xlu1 %v493_v19 }
0x1fd7   :  { %v1020_v20 = vpop.xlane.xlu1 %494 }
0x1fd8   :  { %vm498_vm12 = vcmp.eq.f32.partialorder %v493_v19, %v1020_v20 }
0x1fd9   :  { %v499_v22 = vsel %vm498_vm12, %v917_v1, 128 }
0x1fda   :  { %v501_v23 = vshra.s32 %v499_v22, 16  ;;  %v500_v25 = vand.u32 65535, %v499_v22 }
0x1fdc   :  { %v503_v24 = vcvt.s32.f32 %v501_v23  ;;  %v502_v28 = vcvt.s32.f32 %v500_v25 }
0x1fde   :  { %504 = vmin.xlane.f32.xlu0 %v503_v24 }
0x206b   :  { %v505_v27 = vpop.xlane.xlu0 %504 }
0x206c   :  { %vm506_vm13 = vcmp.eq.f32.partialorder %v503_v24, %v505_v27  ;;  %v511_v30 = vcvt.f32.s32 %v505_v27 }
0x206d   :  { %v507_v29 = vsel %vm506_vm13, %v502_v28, inf }
0x206e   :  { %508 = vmin.xlane.f32.xlu1 %v507_v29  ;;  %v512_v32 = vshll.u32 %v511_v30, 16 }
0x20fb   :  { %v509_v31 = vpop.xlane.xlu1 %508 }
0x20fc   :  { %v510_v34 = vcvt.f32.s32 %v509_v31 }
0x20fe   :  { %v513_v35 = vadd.s32 %v512_v32, %v510_v34 }
0x2100   :  { %vm514_vm14 = vcmp.eq.s32.totalorder %v917_v1, %v513_v35 }
0x2101   :  { %v515_v36 = vsel %vm514_vm14, %v920_v2, 0.0  ;;  %v526_v51 = vsel %vm514_vm14, inf, %v491_v15 }
0x2102   :  { %516 = vadd.xlane.f32.xlu0 %v515_v36 }
0x218f   :  { %v517_v37 = vpop.xlane.xlu0 %516 }
0x2190   :  { %v518_v38 = vsub.f32 %v920_v2, %v517_v37 }
0x2192   :  { %v519_v39 = vmul.f32 %v518_v38, %v518_v38 }
0x2194   :  { %v520_v40 = vrot.slane %v519_v39, 4 }
0x2196   :  { %v521_v41 = vadd.f32 %v520_v40, %v519_v39  ;;  %v1039_v39 = vld [vmem:[#allocation2] sm:$0xff] }
0x2198   :  { %v522_v43 = vrot.slane %v521_v41, 2 }
0x219a   :  { %v523_v44 = vadd.f32 %v522_v43, %v521_v41 }
0x219c   :  { %v524_v45 = vrot.slane %v523_v44, 1 }
0x219e   :  { %v525_v46 = vadd.f32 %v524_v45, %v523_v44 }
0x21a0   :  { %v527_v47 = vmin.f32 %v493_v19, %v525_v46 }
0x21a2   :  { %v528_v52 = vadd.f32 %v527_v47, %v526_v51 }
0x21a4   :  { %529 = vmin.xlane.f32.xlu1 %v528_v52 }
0x2231   :  { %v1027_v53 = vpop.xlane.xlu1 %529 }
0x2232   :  { %vm533_vm15 = vcmp.eq.f32.partialorder %v528_v52, %v1027_v53 }
0x2233   :  { %v534_v55 = vsel %vm533_vm15, %v917_v1, 128 }
0x2234   :  { %v536_v56 = vshra.s32 %v534_v55, 16  ;;  %v535_v58 = vand.u32 65535, %v534_v55 }
0x2236   :  { %v538_v57 = vcvt.s32.f32 %v536_v56  ;;  %v537_v61 = vcvt.s32.f32 %v535_v58 }
0x2238   :  { %539 = vmin.xlane.f32.xlu0 %v538_v57 }
0x22c5   :  { %v540_v59 = vpop.xlane.xlu0 %539 }
0x22c6   :  { %vm541_vm1 = vcmp.eq.f32.partialorder %v538_v57, %v540_v59  ;;  %v546_v63 = vcvt.f32.s32 %v540_v59 }
0x22c7   :  { %v542_v62 = vsel %vm541_vm1, %v537_v61, inf }
0x22c8   :  { %543 = vmin.xlane.f32.xlu1 %v542_v62  ;;  %v547_v3 = vshll.u32 %v546_v63, 16 }
0x2355   :  { %v544_v0 = vpop.xlane.xlu1 %543 }
0x2356   :  { %v545_v4 = vcvt.f32.s32 %v544_v0 }
0x2358   :  { %v548_v5 = vadd.s32 %v547_v3, %v545_v4 }
0x235a   :  { %vm549_vm2 = vcmp.eq.s32.totalorder %v917_v1, %v548_v5 }
0x235b   :  { %v550_v7 = vsel %vm549_vm2, %v920_v2, 0.0  ;;  %v561_v23 = vsel %vm549_vm2, inf, %v526_v51 }
0x235c   :  { %551 = vadd.xlane.f32.xlu0 %v550_v7 }
0x23e9   :  { %v552_v8 = vpop.xlane.xlu0 %551 }
0x23ea   :  { %v553_v9 = vsub.f32 %v920_v2, %v552_v8 }
0x23ec   :  { %v554_v10 = vmul.f32 %v553_v9, %v553_v9 }
0x23ee   :  { %v555_v11 = vrot.slane %v554_v10, 4 }
0x23f0   :  { %v556_v12 = vadd.f32 %v555_v11, %v554_v10 }
0x23f2   :  { %v557_v13 = vrot.slane %v556_v12, 2 }
0x23f4   :  { %v558_v14 = vadd.f32 %v557_v13, %v556_v12 }
0x23f6   :  { %v559_v15 = vrot.slane %v558_v14, 1 }
0x23f8   :  { %v560_v19 = vadd.f32 %v559_v15, %v558_v14 }
0x23fa   :  { %v562_v22 = vmin.f32 %v528_v52, %v560_v19 }
0x23fc   :  { %v563_v24 = vadd.f32 %v562_v22, %v561_v23 }
0x23fe   :  { %564 = vmin.xlane.f32.xlu1 %v563_v24 }
0x248b   :  { %v1034_v25 = vpop.xlane.xlu1 %564 }
0x248c   :  { %vm568_vm3 = vcmp.eq.f32.partialorder %v563_v24, %v1034_v25 }
0x248d   :  { %v569_v27 = vsel %vm568_vm3, %v917_v1, 128 }
0x248e   :  { %v571_v28 = vshra.s32 %v569_v27, 16  ;;  %v570_v2 = vand.u32 65535, %v569_v27 }
0x2490   :  { %v573_v29 = vcvt.s32.f32 %v571_v28  ;;  %v572_v31 = vcvt.s32.f32 %v570_v2 }
0x2492   :  { %574 = vmin.xlane.f32.xlu0 %v573_v29 }
0x251f   :  { %v575_v30 = vpop.xlane.xlu0 %574 }
0x2520   :  { %vm576_vm4 = vcmp.eq.f32.partialorder %v573_v29, %v575_v30  ;;  %v581_v34 = vcvt.f32.s32 %v575_v30 }
0x2521   :  { %v577_v32 = vsel %vm576_vm4, %v572_v31, inf }
0x2522   :  { %578 = vmin.xlane.f32.xlu1 %v577_v32  ;;  %v582_v36 = vshll.u32 %v581_v34, 16 }
0x25af   :  { %v579_v35 = vpop.xlane.xlu1 %578 }
0x25b0   :  { %v580_v37 = vcvt.f32.s32 %v579_v35 }
0x25b2   :  { %v583_v38 = vadd.s32 %v582_v36, %v580_v37 }
0x25b4   :  { %vm584_vm5 = vcmp.eq.s32.totalorder %v917_v1, %v583_v38 }
0x25b5   :  { %v585_v40 = vsel %vm584_vm5, %v1039_v39, 0.0  ;;  %v596_v57 = vsel %vm584_vm5, inf, %v561_v23 }
0x25b6   :  { %586 = vadd.xlane.f32.xlu0 %v585_v40 }
0x2643   :  { %v587_v41 = vpop.xlane.xlu0 %586 }
0x2644   :  { %v588_v43 = vsub.f32 %v1039_v39, %v587_v41 }
0x2646   :  { %v589_v44 = vmul.f32 %v588_v43, %v588_v43 }
0x2648   :  { %v590_v45 = vrot.slane %v589_v44, 4 }
0x264a   :  { %v591_v46 = vadd.f32 %v590_v45, %v589_v44 }
0x264c   :  { %v592_v47 = vrot.slane %v591_v46, 2 }
0x264e   :  { %v593_v51 = vadd.f32 %v592_v47, %v591_v46 }
0x2650   :  { %v594_v52 = vrot.slane %v593_v51, 1 }
0x2652   :  { %v595_v55 = vadd.f32 %v594_v52, %v593_v51 }
0x2654   :  { %v597_v56 = vmin.f32 %v563_v24, %v595_v55 }
0x2656   :  { %v598_v58 = vadd.f32 %v597_v56, %v596_v57 }
0x2658   :  { %599 = vmin.xlane.f32.xlu1 %v598_v58 }
0x26e5   :  { %v1043_v59 = vpop.xlane.xlu1 %599 }
0x26e6   :  { %vm603_vm6 = vcmp.eq.f32.partialorder %v598_v58, %v1043_v59 }
0x26e7   :  { %v604_v61 = vsel %vm603_vm6, %v917_v1, 128 }
0x26e8   :  { %v606_v62 = vshra.s32 %v604_v61, 16  ;;  %v605_v0 = vand.u32 65535, %v604_v61 }
0x26ea   :  { %v608_v63 = vcvt.s32.f32 %v606_v62  ;;  %v607_v4 = vcvt.s32.f32 %v605_v0 }
0x26ec   :  { %609 = vmin.xlane.f32.xlu0 %v608_v63 }
0x2779   :  { %v610_v3 = vpop.xlane.xlu0 %609 }
0x277a   :  { %vm611_vm7 = vcmp.eq.f32.partialorder %v608_v63, %v610_v3  ;;  %v616_v7 = vcvt.f32.s32 %v610_v3 }
0x277b   :  { %v612_v5 = vsel %vm611_vm7, %v607_v4, inf }
0x277c   :  { %613 = vmin.xlane.f32.xlu1 %v612_v5  ;;  %v617_v9 = vshll.u32 %v616_v7, 16 }
0x2809   :  { %v614_v8 = vpop.xlane.xlu1 %613 }
0x280a   :  { %v615_v10 = vcvt.f32.s32 %v614_v8 }
0x280c   :  { %v618_v11 = vadd.s32 %v617_v9, %v615_v10 }
0x280e   :  { %vm619_vm8 = vcmp.eq.s32.totalorder %v917_v1, %v618_v11 }
0x280f   :  { %v620_v12 = vsel %vm619_vm8, %v1039_v39, 0.0  ;;  %v631_v2 = vsel %vm619_vm8, inf, %v596_v57 }
0x2810   :  { %621 = vadd.xlane.f32.xlu0 %v620_v12 }
0x289d   :  { %v622_v13 = vpop.xlane.xlu0 %621 }
0x289e   :  { %v623_v14 = vsub.f32 %v1039_v39, %v622_v13 }
0x28a0   :  { %v624_v15 = vmul.f32 %v623_v14, %v623_v14 }
0x28a2   :  { %v625_v19 = vrot.slane %v624_v15, 4 }
0x28a4   :  { %v626_v22 = vadd.f32 %v625_v19, %v624_v15 }
0x28a6   :  { %v627_v23 = vrot.slane %v626_v22, 2 }
0x28a8   :  { %v628_v24 = vadd.f32 %v627_v23, %v626_v22 }
0x28aa   :  { %v629_v27 = vrot.slane %v628_v24, 1 }
0x28ac   :  { %v630_v28 = vadd.f32 %v629_v27, %v628_v24 }
0x28ae   :  { %v632_v29 = vmin.f32 %v598_v58, %v630_v28 }
0x28b0   :  { %v633_v30 = vadd.f32 %v632_v29, %v631_v2 }
0x28b2   :  { %634 = vmin.xlane.f32.xlu1 %v633_v30 }
0x293f   :  { %v1050_v31 = vpop.xlane.xlu1 %634 }
0x2940   :  { %vm638_vm9 = vcmp.eq.f32.partialorder %v633_v30, %v1050_v31 }
0x2941   :  { %v639_v32 = vsel %vm638_vm9, %v917_v1, 128  ;;  %vm76_vm9 = vcmp.eq.s32.totalorder %v917_v1, 1 }
0x2942   :  { %v641_v34 = vshra.s32 %v639_v32, 16  ;;  %v640_v36 = vand.u32 65535, %v639_v32 }
0x2944   :  { %v643_v35 = vcvt.s32.f32 %v641_v34  ;;  %v642_v38 = vcvt.s32.f32 %v640_v36 }
0x2946   :  { %644 = vmin.xlane.f32.xlu0 %v643_v35 }
0x29d3   :  { %v645_v37 = vpop.xlane.xlu0 %644 }
0x29d4   :  { %vm646_vm10 = vcmp.eq.f32.partialorder %v643_v35, %v645_v37  ;;  %v651_v41 = vcvt.f32.s32 %v645_v37 }
0x29d5   :  { %v647_v40 = vsel %vm646_vm10, %v642_v38, inf  ;;  %vm111_vm10 = vcmp.eq.s32.totalorder %v917_v1, 2 }
0x29d6   :  { %648 = vmin.xlane.f32.xlu1 %v647_v40  ;;  %v652_v44 = vshll.u32 %v651_v41, 16 }
0x2a63   :  { %v649_v43 = vpop.xlane.xlu1 %648 }
0x2a64   :  { %v650_v45 = vcvt.f32.s32 %v649_v43 }
0x2a66   :  { %v653_v46 = vadd.s32 %v652_v44, %v650_v45 }
0x2a68   :  { %vm654_vm11 = vcmp.eq.s32.totalorder %v917_v1, %v653_v46 }
0x2a69   :  { %v655_v47 = vsel %vm654_vm11, %v1039_v39, 0.0  ;;  %v666_v3 = vsel %vm654_vm11, inf, %v631_v2  ;;  %vm146_vm11 = vcmp.eq.s32.totalorder %v917_v1, 3 }
0x2a6a   :  { %656 = vadd.xlane.f32.xlu0 %v655_v47 }
0x2af7   :  { %v657_v51 = vpop.xlane.xlu0 %656 }
0x2af8   :  { %v658_v52 = vsub.f32 %v1039_v39, %v657_v51 }
0x2afa   :  { %v659_v55 = vmul.f32 %v658_v52, %v658_v52 }
0x2afc   :  { %v660_v56 = vrot.slane %v659_v55, 4 }
0x2afe   :  { %v661_v57 = vadd.f32 %v660_v56, %v659_v55 }
0x2b00   :  { %v662_v58 = vrot.slane %v661_v57, 2 }
0x2b02   :  { %v663_v61 = vadd.f32 %v662_v58, %v661_v57 }
0x2b04   :  { %v664_v62 = vrot.slane %v663_v61, 1 }
0x2b06   :  { %v665_v63 = vadd.f32 %v664_v62, %v663_v61 }
0x2b08   :  { %v667_v0 = vmin.f32 %v633_v30, %v665_v63 }
0x2b0a   :  { %v668_v4 = vadd.f32 %v667_v0, %v666_v3 }
0x2b0c   :  { %669 = vmin.xlane.f32.xlu1 %v668_v4 }
0x2b99   :  { %v1057_v5 = vpop.xlane.xlu1 %669 }
0x2b9a   :  { %vm673_vm12 = vcmp.eq.f32.partialorder %v668_v4, %v1057_v5 }
0x2b9b   :  { %v674_v7 = vsel %vm673_vm12, %v917_v1, 128  ;;  %vm181_vm12 = vcmp.eq.s32.totalorder %v917_v1, 4 }
0x2b9c   :  { %v676_v8 = vshra.s32 %v674_v7, 16  ;;  %v675_v10 = vand.u32 65535, %v674_v7 }
0x2b9e   :  { %v678_v9 = vcvt.s32.f32 %v676_v8  ;;  %v677_v12 = vcvt.s32.f32 %v675_v10 }
0x2ba0   :  { %679 = vmin.xlane.f32.xlu0 %v678_v9 }
0x2c2d   :  { %v680_v11 = vpop.xlane.xlu0 %679 }
0x2c2e   :  { %vm681_vm13 = vcmp.eq.f32.partialorder %v678_v9, %v680_v11  ;;  %v686_v14 = vcvt.f32.s32 %v680_v11 }
0x2c2f   :  { %v682_v13 = vsel %vm681_vm13, %v677_v12, inf  ;;  %vm216_vm13 = vcmp.eq.s32.totalorder %v917_v1, 5 }
0x2c30   :  { %683 = vmin.xlane.f32.xlu1 %v682_v13  ;;  %v687_v19 = vshll.u32 %v686_v14, 16 }
0x2cbd   :  { %v684_v15 = vpop.xlane.xlu1 %683 }
0x2cbe   :  { %v685_v22 = vcvt.f32.s32 %v684_v15 }
0x2cc0   :  { %v688_v23 = vadd.s32 %v687_v19, %v685_v22 }
0x2cc2   :  { %vm689_vm14 = vcmp.eq.s32.totalorder %v917_v1, %v688_v23 }
0x2cc3   :  { %v690_v24 = vsel %vm689_vm14, %v1039_v39, 0.0  ;;  %v701_v38 = vsel %vm689_vm14, inf, %v666_v3  ;;  %vm251_vm14 = vcmp.eq.s32.totalorder %v917_v1, 6 }
0x2cc4   :  { %691 = vadd.xlane.f32.xlu0 %v690_v24 }
0x2d51   :  { %v692_v27 = vpop.xlane.xlu0 %691 }
0x2d52   :  { %v693_v28 = vsub.f32 %v1039_v39, %v692_v27 }
0x2d54   :  { %v694_v29 = vmul.f32 %v693_v28, %v693_v28 }
0x2d56   :  { %v695_v2 = vrot.slane %v694_v29, 4 }
0x2d58   :  { %v696_v30 = vadd.f32 %v695_v2, %v694_v29 }
0x2d5a   :  { %v697_v32 = vrot.slane %v696_v30, 2 }
0x2d5c   :  { %v698_v34 = vadd.f32 %v697_v32, %v696_v30 }
0x2d5e   :  { %v699_v35 = vrot.slane %v698_v34, 1 }
0x2d60   :  { %v700_v36 = vadd.f32 %v699_v35, %v698_v34 }
0x2d62   :  { %v702_v37 = vmin.f32 %v668_v4, %v700_v36 }
0x2d64   :  { %v703_v40 = vadd.f32 %v702_v37, %v701_v38 }
0x2d66   :  { %704 = vmin.xlane.f32.xlu1 %v703_v40 }
0x2df3   :  { %v1064_v41 = vpop.xlane.xlu1 %704 }
0x2df4   :  { %vm708_vm15 = vcmp.eq.f32.partialorder %v703_v40, %v1064_v41 }
0x2df5   :  { %v709_v43 = vsel %vm708_vm15, %v917_v1, 128  ;;  %vm286_vm15 = vcmp.eq.s32.totalorder %v917_v1, 7 }
0x2df6   :  { %v711_v44 = vshra.s32 %v709_v43, 16  ;;  %v710_v46 = vand.u32 65535, %v709_v43 }
0x2df8   :  { %v713_v45 = vcvt.s32.f32 %v711_v44  ;;  %v712_v51 = vcvt.s32.f32 %v710_v46 }
0x2dfa   :  { %714 = vmin.xlane.f32.xlu0 %v713_v45 }
0x2e87   :  { %v715_v47 = vpop.xlane.xlu0 %714 }
0x2e88   :  { %vm716_vm1 = vcmp.eq.f32.partialorder %v713_v45, %v715_v47  ;;  %v721_v55 = vcvt.f32.s32 %v715_v47 }
0x2e89   :  { %v717_v52 = vsel %vm716_vm1, %v712_v51, inf  ;;  %vm356_vm1 = vcmp.eq.s32.totalorder %v917_v1, 9 }
0x2e8a   :  { %718 = vmin.xlane.f32.xlu1 %v717_v52  ;;  %v722_v57 = vshll.u32 %v721_v55, 16 }
0x2f17   :  { %v719_v56 = vpop.xlane.xlu1 %718 }
0x2f18   :  { %v720_v58 = vcvt.f32.s32 %v719_v56 }
0x2f1a   :  { %v723_v61 = vadd.s32 %v722_v57, %v720_v58 }
0x2f1c   :  { %vm724_vm2 = vcmp.eq.s32.totalorder %v917_v1, %v723_v61 }
0x2f1d   :  { %v725_v62 = vsel %vm724_vm2, %v1039_v39, 0.0  ;;  %v736_v13 = vsel %vm724_vm2, inf, %v701_v38  ;;  %vm391_vm2 = vcmp.eq.s32.totalorder %v917_v1, 10 }
0x2f1e   :  { %726 = vadd.xlane.f32.xlu0 %v725_v62 }
0x2fab   :  { %v727_v63 = vpop.xlane.xlu0 %726 }
0x2fac   :  { %v728_v0 = vsub.f32 %v1039_v39, %v727_v63 }
0x2fae   :  { %v729_v3 = vmul.f32 %v728_v0, %v728_v0 }
0x2fb0   :  { %v730_v4 = vrot.slane %v729_v3, 4 }
0x2fb2   :  { %v731_v7 = vadd.f32 %v730_v4, %v729_v3 }
0x2fb4   :  { %v732_v8 = vrot.slane %v731_v7, 2 }
0x2fb6   :  { %v733_v9 = vadd.f32 %v732_v8, %v731_v7 }
0x2fb8   :  { %v734_v10 = vrot.slane %v733_v9, 1 }
0x2fba   :  { %v735_v11 = vadd.f32 %v734_v10, %v733_v9 }
0x2fbc   :  { %v737_v12 = vmin.f32 %v703_v40, %v735_v11 }
0x2fbe   :  { %v738_v14 = vadd.f32 %v737_v12, %v736_v13 }
0x2fc0   :  { %739 = vmin.xlane.f32.xlu1 %v738_v14 }
0x304d   :  { %v1071_v15 = vpop.xlane.xlu1 %739 }
0x304e   :  { %vm743_vm3 = vcmp.eq.f32.partialorder %v738_v14, %v1071_v15 }
0x304f   :  { %v744_v19 = vsel %vm743_vm3, %v917_v1, 128  ;;  %vm426_vm3 = vcmp.eq.s32.totalorder %v917_v1, 11 }
0x3050   :  { %v746_v22 = vshra.s32 %v744_v19, 16  ;;  %v745_v24 = vand.u32 65535, %v744_v19 }
0x3052   :  { %v748_v23 = vcvt.s32.f32 %v746_v22  ;;  %v747_v28 = vcvt.s32.f32 %v745_v24 }
0x3054   :  { %749 = vmin.xlane.f32.xlu0 %v748_v23 }
0x30e1   :  { %v750_v27 = vpop.xlane.xlu0 %749 }
0x30e2   :  { %vm751_vm4 = vcmp.eq.f32.partialorder %v748_v23, %v750_v27  ;;  %v756_v2 = vcvt.f32.s32 %v750_v27 }
0x30e3   :  { %v752_v29 = vsel %vm751_vm4, %v747_v28, inf  ;;  %vm461_vm4 = vcmp.eq.s32.totalorder %v917_v1, 12 }
0x30e4   :  { %753 = vmin.xlane.f32.xlu1 %v752_v29  ;;  %v757_v32 = vshll.u32 %v756_v2, 16 }
0x3171   :  { %v754_v30 = vpop.xlane.xlu1 %753 }
0x3172   :  { %v755_v34 = vcvt.f32.s32 %v754_v30 }
0x3174   :  { %v758_v35 = vadd.s32 %v757_v32, %v755_v34  ;;  %v42_v34 = vsel %vm24_vm0, %v929_v16, 0.0  ;;  %vm321_vm0 = vcmp.eq.s32.totalorder %v917_v1, 8 }
0x3176   :  { %vm759_vm5 = vcmp.eq.s32.totalorder %v917_v1, %v758_v35 }
0x3177   :  { %v760_v36 = vsel %vm759_vm5, %v1039_v39, 0.0  ;;  %v771_v55 = vsel %vm759_vm5, inf, %v736_v13  ;;  %vm496_vm5 = vcmp.eq.s32.totalorder %v917_v1, 13 }
0x3178   :  { %761 = vadd.xlane.f32.xlu0 %v760_v36 }
0x3205   :  { %v762_v37 = vpop.xlane.xlu0 %761 }
0x3206   :  { %v763_v38 = vsub.f32 %v1039_v39, %v762_v37 }
0x3208   :  { %v764_v40 = vmul.f32 %v763_v38, %v763_v38 }
0x320a   :  { %v765_v43 = vrot.slane %v764_v40, 4 }
0x320c   :  { %v766_v44 = vadd.f32 %v765_v43, %v764_v40 }
0x320e   :  { %v767_v45 = vrot.slane %v766_v44, 2 }
0x3210   :  { %v768_v46 = vadd.f32 %v767_v45, %v766_v44 }
0x3212   :  { %v769_v47 = vrot.slane %v768_v46, 1 }
0x3214   :  { %v770_v51 = vadd.f32 %v769_v47, %v768_v46 }
0x3216   :  { %v772_v52 = vmin.f32 %v738_v14, %v770_v51 }
0x3218   :  { %v773_v56 = vadd.f32 %v772_v52, %v771_v55 }
0x321a   :  { %774 = vmin.xlane.f32.xlu1 %v773_v56 }
0x32a7   :  { %v1078_v57 = vpop.xlane.xlu1 %774 }
0x32a8   :  { %vm778_vm6 = vcmp.eq.f32.partialorder %v773_v56, %v1078_v57 }
0x32a9   :  { %v779_v58 = vsel %vm778_vm6, %v917_v1, 128  ;;  %vm531_vm6 = vcmp.eq.s32.totalorder %v917_v1, 14 }
0x32aa   :  { %v781_v61 = vshra.s32 %v779_v58, 16  ;;  %v780_v63 = vand.u32 65535, %v779_v58 }
0x32ac   :  { %v783_v62 = vcvt.s32.f32 %v781_v61  ;;  %v782_v3 = vcvt.s32.f32 %v780_v63 }
0x32ae   :  { %784 = vmin.xlane.f32.xlu0 %v783_v62 }
0x333b   :  { %v785_v0 = vpop.xlane.xlu0 %784 }
0x333c   :  { %vm786_vm7 = vcmp.eq.f32.partialorder %v783_v62, %v785_v0  ;;  %v791_v7 = vcvt.f32.s32 %v785_v0 }
0x333d   :  { %v787_v4 = vsel %vm786_vm7, %v782_v3, inf  ;;  %vm566_vm7 = vcmp.eq.s32.totalorder %v917_v1, 15 }
0x333e   :  { %788 = vmin.xlane.f32.xlu1 %v787_v4  ;;  %v792_v9 = vshll.u32 %v791_v7, 16 }
0x33cb   :  { %v789_v8 = vpop.xlane.xlu1 %788 }
0x33cc   :  { %v790_v10 = vcvt.f32.s32 %v789_v8 }
0x33ce   :  { %v793_v11 = vadd.s32 %v792_v9, %v790_v10 }
0x33d0   :  { %vm794_vm8 = vcmp.eq.s32.totalorder %v917_v1, %v793_v11 }
0x33d1   :  { %v795_v12 = vsel %vm794_vm8, %v1039_v39, 0.0  ;;  %v806_v30 = vsel %vm794_vm8, inf, %v771_v55  ;;  %vm601_vm8 = vcmp.eq.s32.totalorder %v917_v1, 16 }
0x33d2   :  { %796 = vadd.xlane.f32.xlu0 %v795_v12 }
0x345f   :  { %v797_v13 = vpop.xlane.xlu0 %796 }
0x3460   :  { %v798_v14 = vsub.f32 %v1039_v39, %v797_v13  ;;  %v77_v39 = vsel %vm76_vm9, %v936_v42, %v42_v34  ;;  %vm636_vm9 = vcmp.eq.s32.totalorder %v917_v1, 17 }
0x3461   :  { %v112_v35 = vsel %vm111_vm10, %v943_v6, %v77_v39  ;;  %vm671_vm10 = vcmp.eq.s32.totalorder %v917_v1, 18 }
0x3462   :  { %v799_v19 = vmul.f32 %v798_v14, %v798_v14  ;;  %v147_v36 = vsel %vm146_vm11, %v950_v33, %v112_v35  ;;  %vm706_vm11 = vcmp.eq.s32.totalorder %v917_v1, 19 }
0x3463   :  { %v182_v37 = vsel %vm181_vm12, %v957_v60, %v147_v36  ;;  %vm741_vm12 = vcmp.eq.s32.totalorder %v917_v1, 20 }
0x3464   :  { %v800_v22 = vrot.slane %v799_v19, 4  ;;  %v217_v16 = vsel %vm216_vm13, %v964_v26, %v182_v37  ;;  %vm776_vm13 = vcmp.eq.s32.totalorder %v917_v1, 21 }
0x3465   :  { %v252_v42 = vsel %vm251_vm14, %v971_v54, %v217_v16  ;;  %vm811_vm14 = vcmp.eq.s32.totalorder %v917_v1, 22 }
0x3466   :  { %v801_v23 = vadd.f32 %v800_v22, %v799_v19  ;;  %v287_v6 = vsel %vm286_vm15, %v978_v21, %v252_v42 }
0x3467   :  { %v322_v33 = vsel %vm321_vm0, %v985_v50, %v287_v6 }
0x3468   :  { %v802_v24 = vrot.slane %v801_v23, 2  ;;  %v357_v60 = vsel %vm356_vm1, %v992_v18, %v322_v33 }
0x3469   :  { %v392_v26 = vsel %vm391_vm2, %v999_v48, %v357_v60 }
0x346a   :  { %v803_v27 = vadd.f32 %v802_v24, %v801_v23  ;;  %v427_v54 = vsel %vm426_vm3, %v1006_v17, %v392_v26 }
0x346b   :  { %v462_v21 = vsel %vm461_vm4, %v1013_v49, %v427_v54 }
0x346c   :  { %v804_v28 = vrot.slane %v803_v27, 1  ;;  %v497_v50 = vsel %vm496_vm5, %v1020_v20, %v462_v21 }
0x346d   :  { %v532_v18 = vsel %vm531_vm6, %v1027_v53, %v497_v50 }
0x346e   :  { %v805_v29 = vadd.f32 %v804_v28, %v803_v27  ;;  %v567_v48 = vsel %vm566_vm7, %v1034_v25, %v532_v18 }
0x346f   :  { %v602_v17 = vsel %vm601_vm8, %v1043_v59, %v567_v48 }
0x3470   :  { %v807_v2 = vmin.f32 %v773_v56, %v805_v29  ;;  %v637_v49 = vsel %vm636_vm9, %v1050_v31, %v602_v17 }
0x3471   :  { %v672_v20 = vsel %vm671_vm10, %v1057_v5, %v637_v49 }
0x3472   :  { %v808_v32 = vadd.f32 %v807_v2, %v806_v30  ;;  %v707_v53 = vsel %vm706_vm11, %v1064_v41, %v672_v20 }
0x3473   :  { %v742_v25 = vsel %vm741_vm12, %v1071_v15, %v707_v53 }
0x3474   :  { %809 = vmin.xlane.f32.xlu1 %v808_v32  ;;  %v777_v38 = vsel %vm776_vm13, %v1078_v57, %v742_v25 }
0x3501   :  { %v810_v40 = vpop.xlane.xlu1 %809 }
0x3502   :  { %v812_v59 = vsel %vm811_vm14, %v810_v40, %v777_v38 }
0x3503   :  { %841 = vrsqrt.f32 %v812_v59  ;;  %vm815_vm15 = vcmp.eq.f32.partialorder %v812_v59, inf  ;;  %v818_v31 = vand.u32 2147483648, %v812_v59  ;;  %vm817_vm0 = vcmp.eq.f32.partialorder %v812_v59, 0.0 }
0x350d   :  { %v842_v43 = vpop.eup %841 }
0x350e   :  { %v814_v44 = vmul.f32 %v842_v43, %v812_v59 }
0x3510   :  { %v816_v5 = vsel %vm815_vm15, %v812_v59, %v814_v44 }
0x3511   :  { %v819_v45 = vsel %vm817_vm0, %v818_v31, %v816_v5 }
0x3512   :  { %vm820_vm1 = vcmp.gt.f32.partialorder %v819_v45, inf }
0x3513   :  { %v821_v41 = vsel %vm820_vm1, inf, %v819_v45 }
0x3514   :  { %822 = vst [vmem:[#allocation5] sm:$0x1] %v821_v41 }
0x3515   :  { %877 = shalt.err (!%p874_p12)
}
0x3516   :  { %s878_s23 = scalar_lea.hbm %s1144_s1, 16 }
0x3517   :  { %p879_p13 = scmp.ne.s32.totalorder %s1144_s1, %s878_s23  ;;  %p882_p0 = scmp.lt.u32.totalorder %s878_s23, %s1144_s1 }
0x3519   :  { %p884_p1 = pnand %p882_p0, %p879_p13 }
0x351b   :  { %887 = shalt.err (!%p884_p1)
}
0x351c   :  { %832 = dma.vmem_to_hbm [thread:$0]  %s830_s18, 16, %s1144_s1, [#allocation4]  }
0x351d   :  { %890 = dma.done.wait [#allocation4], 16  }
0x351e   :  { %891 = vsyncadd [#allocation4], 4294967280 }
0x351f   :  { %836 = vsyncpa [#allocation3], 1 }
0x3520   :  { %837 = vsyncpa [#allocation4], 1 }

</bundles_post_ra>
